<compile_context>
chip_gen: v7x
topology: tpu7x:2x2x1
jax: 0.10.0
libtpu: 0.0.40
codegen_flags: <defaults>
</compile_context>

<pallas_src>
import functools

import jax
import jax.numpy as jnp
import numpy as np
from jax.experimental import pallas as pl
from jax.experimental.pallas import tpu as pltpu

EPS = 1e-5


def _round_up(x, m):
    return ((x + m - 1) // m) * m


def _fused_kernel(gate_ref, x127_ref, x121_ref, w_ref,
                  g1_ref, b1_ref, g2_ref, b2_ref,
                  out_ref, x133_s, x137_s, *, p_true, tile_co):
    # gate_ref : (C_pad, 1) or (C_pad, P_pad) f32   raw sigmoid input
    # x127_ref : (C_pad, P_pad) f32                 (resident, fetched once)
    # x121_ref : (TILE_CO, P_pad) f32               residual rows for this tile
    # w_ref    : (1, TILE_CO, C_pad) bf16           streamed weight slab
    # g*/b*    : (TILE_CO, 1) f32                   BN affine params (per tile)
    # out_ref  : (TILE_CO, P_pad) f32
    # x133_s   : (C_pad, P_pad) bf16 scratch        gated conv1 input (resident)
    # x137_s   : (C_pad, P_pad) bf16 scratch        relu output / conv2 input
    ph = pl.program_id(0)          # 0: conv1+BN1+add+relu   1: conv2+BN2
    ct = pl.program_id(1)          # output-channel tile index

    p_pad = x133_s.shape[1]
    inv_p = jnp.float32(1.0 / p_true)
    col_mask = jax.lax.broadcasted_iota(jnp.int32, (1, p_pad), 1) < p_true

    # Build the gated conv1 input once (first grid step); keep it resident.
    @pl.when(jnp.logical_and(ph == 0, ct == 0))
    def _build_x133():
        s = jax.nn.sigmoid(gate_ref[...])
        x133_s[...] = (s * x127_ref[...]).astype(x133_s.dtype)

    w = w_ref[0]                   # (TILE_CO, C_pad) bf16

    @pl.when(ph == 0)
    def _phase0():
        # conv1 (1x1) as matmul on the MXU, f32 accumulation
        x134 = jnp.dot(w, x133_s[...], preferred_element_type=jnp.float32)
        # One-pass BN stats over the true P columns (padded cols of x134 are 0).
        mean = jnp.sum(x134, axis=1, keepdims=True) * inv_p
        ex2 = jnp.sum(x134 * x134, axis=1, keepdims=True) * inv_p
        var = jnp.maximum(ex2 - mean * mean, 0.0)
        a = g1_ref[...] * jax.lax.rsqrt(var + EPS)
        b = b1_ref[...] - mean * a
        # BN1 + residual + ReLU, fused as x*a + (b + x121)
        x137 = jnp.maximum(x134 * a + (x121_ref[...] + b), 0.0)
        # Zero the padded columns so they cannot pollute BN2's statistics.
        x137 = jnp.where(col_mask, x137, 0.0)
        co0 = pl.multiple_of(ct * tile_co, tile_co)
        x137_s[pl.ds(co0, tile_co), :] = x137.astype(x137_s.dtype)

    @pl.when(ph == 1)
    def _phase1():
        x138 = jnp.dot(w, x137_s[...], preferred_element_type=jnp.float32)
        mean = jnp.sum(x138, axis=1, keepdims=True) * inv_p
        ex2 = jnp.sum(x138 * x138, axis=1, keepdims=True) * inv_p
        var = jnp.maximum(ex2 - mean * mean, 0.0)
        a = g2_ref[...] * jax.lax.rsqrt(var + EPS)
        b = b2_ref[...] - mean * a
        out_ref[...] = (x138 * a + b).astype(out_ref.dtype)


def fused_forward(x131, x127, x121, w1, g1, b1, w2, g2, b2, tile_co=None):
    """x131: (N,C,1,1)  x127/x121: (N,C,H,W)  w1/w2: (C,C)  g*/b*: (C,)"""
    N, C, H, W = x127.shape
    P = N * H * W

    # ---- tiling ------------------------------------------------------------
    if tile_co is None:
        tile_co = min(512, _round_up(C, 128))     # e.g. C=1392 -> 512-row slabs
    assert tile_co % 128 == 0
    C_pad = _round_up(C, tile_co)
    P_pad = _round_up(P, 128)
    nt = C_pad // tile_co

    # ---- layout: NCHW -> (C_pad, P_pad), zero padded -----------------------
    def to_cp(t):
        t = jnp.transpose(t, (1, 0, 2, 3)).reshape(C, P)
        return jnp.pad(t, ((0, C_pad - C), (0, P_pad - P)))

    x127_cp = to_cp(x127)
    x121_cp = to_cp(x121)

    # Gate (sigmoid applied inside the kernel).
    if N == 1:
        gate = jnp.pad(x131.reshape(C, 1), ((0, C_pad - C), (0, 0)))
    else:
        # Per-batch gates: expand to one gate value per (channel, column).
        g = jnp.transpose(x131, (1, 0, 2, 3)).reshape(C, N, 1)
        g = jnp.broadcast_to(g, (C, N, H * W)).reshape(C, P)
        gate = jnp.pad(g, ((0, C_pad - C), (0, P_pad - P)))

    colpad = lambda v: jnp.pad(v.reshape(C, 1).astype(jnp.float32),
                               ((0, C_pad - C), (0, 0)))

    # Weights: pad, cast to bf16, stack so one BlockSpec streams both convs.
    wpad = lambda w: jnp.pad(w, ((0, C_pad - C), (0, C_pad - C)))
    w_all = jnp.stack([wpad(w1), wpad(w2)]).astype(jnp.bfloat16)  # (2,C_pad,C_pad)

    kernel = functools.partial(_fused_kernel, p_true=int(P), tile_co=tile_co)

    out_cp = pl.pallas_call(
        kernel,
        out_shape=jax.ShapeDtypeStruct((C_pad, P_pad), jnp.float32),
        grid_spec=pltpu.PrefetchScalarGridSpec(
            num_scalar_prefetch=0,
            grid=(2, nt),                                   # (phase, c_out tile)
            in_specs=[
                # gate: resident, fetched once
                pl.BlockSpec(gate.shape, lambda ph, ct: (0, 0)),
                # x127: resident, fetched once
                pl.BlockSpec((C_pad, P_pad), lambda ph, ct: (0, 0)),
                # x121: per-tile in phase 0, pinned to block 0 in phase 1
                pl.BlockSpec((tile_co, P_pad), lambda ph, ct: (ct * (1 - ph), 0)),
                # streamed weight slab: w1 tiles in phase 0, w2 tiles in phase 1
                pl.BlockSpec((1, tile_co, C_pad), lambda ph, ct: (ph, ct, 0)),
                # BN1 params (phase 0)
                pl.BlockSpec((tile_co, 1), lambda ph, ct: (ct * (1 - ph), 0)),
                pl.BlockSpec((tile_co, 1), lambda ph, ct: (ct * (1 - ph), 0)),
                # BN2 params (phase 1)
                pl.BlockSpec((tile_co, 1), lambda ph, ct: (ct * ph, 0)),
                pl.BlockSpec((tile_co, 1), lambda ph, ct: (ct * ph, 0)),
            ],
            out_specs=pl.BlockSpec((tile_co, P_pad), lambda ph, ct: (ct * ph, 0)),
            scratch_shapes=[
                pltpu.VMEM((C_pad, P_pad), jnp.bfloat16),   # x133 (resident)
                pltpu.VMEM((C_pad, P_pad), jnp.bfloat16),   # x137 (resident)
            ],
        ),
        compiler_params=pltpu.CompilerParams(
            dimension_semantics=("arbitrary", "arbitrary"),
            vmem_limit_bytes=32 * 1024 * 1024,
        ),
    )(gate, x127_cp, x121_cp, w_all, colpad(g1), colpad(b1), colpad(g2), colpad(b2))

    # (C_pad, P_pad) -> crop -> NCHW
    out = out_cp[:C, :P]
    return jnp.transpose(out.reshape(C, N, H, W), (1, 0, 2, 3))


def _reference(x131, x127, x121, w1, g1, b1, w2, g2, b2, mm_dtype=jnp.bfloat16):
    """Pure-JAX reference mirroring the PyTorch forward (training mode).
    Matmul inputs are cast to `mm_dtype` (f32 accumulation) to match the
    kernel's intentional bf16 MXU precision."""
    x133 = (jax.nn.sigmoid(x131) * x127).astype(mm_dtype)
    x134 = jnp.einsum('oc,nchw->nohw', w1.astype(mm_dtype), x133,
                      preferred_element_type=jnp.float32)
    m1 = jnp.mean(x134, axis=(0, 2, 3), keepdims=True)
    v1 = jnp.var(x134, axis=(0, 2, 3), keepdims=True)
    x135 = (x134 - m1) / jnp.sqrt(v1 + EPS) * g1[None, :, None, None] + b1[None, :, None, None]
    x137 = jnp.maximum(x121 + x135, 0.0).astype(mm_dtype)
    x138 = jnp.einsum('oc,nchw->nohw', w2.astype(mm_dtype), x137,
                      preferred_element_type=jnp.float32)
    m2 = jnp.mean(x138, axis=(0, 2, 3), keepdims=True)
    v2 = jnp.var(x138, axis=(0, 2, 3), keepdims=True)
    return (x138 - m2) / jnp.sqrt(v2 + EPS) * g2[None, :, None, None] + b2[None, :, None, None]


if __name__ == "__main__":
    # Small stand-in for the real shapes (original: N=1, C=1392, H=W=14).
    # C=200 / tile_co=128 exercises channel padding (200->256), P padding
    # (49->128) and the multi-tile (nt=2) streamed-weight path.
    N, C, H, W = 1, 200, 7, 7

    key = jax.random.PRNGKey(0)
    k = jax.random.split(key, 8)

    x131 = jax.random.normal(k[0], (N, C, 1, 1), jnp.float32)   # gate input
    x127 = jax.random.normal(k[1], (N, C, H, W), jnp.float32)
    x121 = jax.random.normal(k[2], (N, C, H, W), jnp.float32)

    w1 = jax.random.normal(k[3], (C, C), jnp.float32) * 0.05    # conv2d43 weight (1x1)
    w2 = jax.random.normal(k[4], (C, C), jnp.float32) * 0.05    # conv2d44 weight (1x1)
    g1 = 1.0 + 0.1 * jax.random.normal(k[5], (C,), jnp.float32)  # bn27 gamma
    b1 = 0.1 * jax.random.normal(k[6], (C,), jnp.float32)        # bn27 beta
    g2 = 1.0 + 0.1 * jax.random.normal(k[7], (C,), jnp.float32)  # bn28 gamma
    b2 = jnp.zeros((C,), jnp.float32)                            # bn28 beta

    fused = jax.jit(fused_forward, static_argnames=("tile_co",))
    out = fused(x131, x127, x121, w1, g1, b1, w2, g2, b2, tile_co=128)
    out = jax.block_until_ready(out)

    ref = _reference(x131, x127, x121, w1, g1, b1, w2, g2, b2)
    assert out.shape == (N, C, H, W)
    np.testing.assert_allclose(np.asarray(out), np.asarray(ref), rtol=1e-2, atol=1e-2)

    print("KERNEL_OK")
</pallas_src>

<mosaic_0001>
module attributes {stable_mosaic.version = 11 : i64} {
  func.func @_fused_kernel(%arg0: i32, %arg1: i32, %arg2: memref<256x1xf32, #tpu.memory_space<vmem>>, %arg3: memref<256x128xf32, #tpu.memory_space<vmem>>, %arg4: memref<128x128xf32, #tpu.memory_space<vmem>>, %arg5: memref<1x128x256xbf16, #tpu.memory_space<vmem>>, %arg6: memref<128x1xf32, #tpu.memory_space<vmem>>, %arg7: memref<128x1xf32, #tpu.memory_space<vmem>>, %arg8: memref<128x1xf32, #tpu.memory_space<vmem>>, %arg9: memref<128x1xf32, #tpu.memory_space<vmem>>, %arg10: memref<128x128xf32, #tpu.memory_space<vmem>>, %arg11: memref<256x128xbf16, #tpu.memory_space<vmem>>, %arg12: memref<256x128xbf16, #tpu.memory_space<vmem>>) attributes {dimension_semantics = [#tpu.dimension_semantics<arbitrary>, #tpu.dimension_semantics<arbitrary>], iteration_bounds = array<i64: 2, 2>, scalar_prefetch = 0 : i64, scratch_operands = 2 : i64, tpu.core_type = #tpu.core_type<tc>, window_params = [{pipeline_mode = #tpu.pipeline_mode<synchronous>, transform_indices = @transform_0, window_bounds = array<i64: 256, 1>}, {pipeline_mode = #tpu.pipeline_mode<synchronous>, transform_indices = @transform_1, window_bounds = array<i64: 256, 128>}, {transform_indices = @transform_2, window_bounds = array<i64: 128, 128>}, {transform_indices = @transform_3, window_bounds = array<i64: 1, 128, 256>}, {transform_indices = @transform_4, window_bounds = array<i64: 128, 1>}, {transform_indices = @transform_5, window_bounds = array<i64: 128, 1>}, {transform_indices = @transform_6, window_bounds = array<i64: 128, 1>}, {transform_indices = @transform_7, window_bounds = array<i64: 128, 1>}, {transform_indices = @transform_8, window_bounds = array<i64: 128, 128>}]} {
    %0 = tpu.iota {dimensions = array<i32: 1>} : vector<1x128xi32>
    %c49_i32 = arith.constant 49 : i32
    %1 = vector.broadcast %c49_i32 : i32 to vector<1x128xi32>
    %2 = arith.cmpi slt, %0, %1 : vector<1x128xi32>
    %c0_i32 = arith.constant 0 : i32
    %3 = arith.cmpi eq, %arg0, %c0_i32 : i32
    %c0_i32_0 = arith.constant 0 : i32
    %4 = arith.cmpi eq, %arg1, %c0_i32_0 : i32
    %5 = arith.andi %3, %4 : i1
    %6 = arith.extui %5 : i1 to i32
    %c0_i32_1 = arith.constant 0 : i32
    %7 = arith.cmpi ne, %6, %c0_i32_1 : i32
    scf.if %7 {
      %c0_8 = arith.constant 0 : index
      %c0_9 = arith.constant 0 : index
      %16 = vector.load %arg2[%c0_8, %c0_9] : memref<256x1xf32, #tpu.memory_space<vmem>>, vector<256x1xf32>
      %17 = arith.negf %16 : vector<256x1xf32>
      %18 = math.exp %17 : vector<256x1xf32>
      %cst_10 = arith.constant 1.000000e+00 : f32
      %19 = vector.broadcast %cst_10 : f32 to vector<256x1xf32>
      %20 = arith.addf %19, %18 : vector<256x1xf32>
      %21 = arith.divf %19, %20 : vector<256x1xf32>
      %c0_11 = arith.constant 0 : index
      %c0_12 = arith.constant 0 : index
      %22 = vector.load %arg3[%c0_11, %c0_12] : memref<256x128xf32, #tpu.memory_space<vmem>>, vector<256x128xf32>
      %23 = vector.broadcast %21 : vector<256x1xf32> to vector<256x128xf32>
      %24 = arith.mulf %23, %22 : vector<256x128xf32>
      %25 = arith.truncf %24 : vector<256x128xf32> to vector<256x128xbf16>
      %c0_13 = arith.constant 0 : index
      %c0_14 = arith.constant 0 : index
      %26 = vector.load %arg11[%c0_13, %c0_14] : memref<256x128xbf16, #tpu.memory_space<vmem>>, vector<256x128xbf16>
      tpu.vector_store %arg11[%c0_13, %c0_14], %25 {strides = array<i32>} : memref<256x128xbf16, #tpu.memory_space<vmem>>, vector<256x128xbf16>,
    } else {
    }
    %c0 = arith.constant 0 : index
    %c0_2 = arith.constant 0 : index
    %c0_3 = arith.constant 0 : index
    %8 = vector.load %arg5[%c0, %c0_2, %c0_3] : memref<1x128x256xbf16, #tpu.memory_space<vmem>>, vector<1x128x256xbf16>
    %9 = vector.shape_cast %8 : vector<1x128x256xbf16> to vector<128x256xbf16>
    %c0_i32_4 = arith.constant 0 : i32
    %10 = arith.cmpi eq, %arg0, %c0_i32_4 : i32
    %11 = arith.extui %10 : i1 to i32
    %cst = arith.constant 0.0204081628 : f32
    %c0_i32_5 = arith.constant 0 : i32
    %12 = arith.cmpi ne, %11, %c0_i32_5 : i32
    scf.if %12 {
      %c0_8 = arith.constant 0 : index
      %c0_9 = arith.constant 0 : index
      %16 = vector.load %arg11[%c0_8, %c0_9] : memref<256x128xbf16, #tpu.memory_space<vmem>>, vector<256x128xbf16>
      %cst_10 = arith.constant dense<0.000000e+00> : vector<128x128xf32>
      %17 = tpu.matmul %9, %16, %cst_10 {dimension_numbers = #tpu.dot_dimension_numbers<[1], [0], [0], [1], [0, 0, 1, 1], [], []>} : vector<128x256xbf16>, vector<256x128xbf16>, vector<128x128xf32> -> vector<128x128xf32>
      %cst_11 = arith.constant dense<0.000000e+00> : vector<128xf32>
      %18 = vector.multi_reduction <add>, %17, %cst_11 [1] : vector<128x128xf32> to vector<128xf32>
      %19 = vector.shape_cast %18 : vector<128xf32> to vector<128x1xf32>
      %20 = vector.broadcast %cst : f32 to vector<128x1xf32>
      %21 = arith.mulf %19, %20 : vector<128x1xf32>
      %22 = arith.mulf %17, %17 : vector<128x128xf32>
      %cst_12 = arith.constant dense<0.000000e+00> : vector<128xf32>
      %23 = vector.multi_reduction <add>, %22, %cst_12 [1] : vector<128x128xf32> to vector<128xf32>
      %24 = vector.shape_cast %23 : vector<128xf32> to vector<128x1xf32>
      %25 = vector.broadcast %cst : f32 to vector<128x1xf32>
      %26 = arith.mulf %24, %25 : vector<128x1xf32>
      %27 = arith.mulf %21, %21 : vector<128x1xf32>
      %28 = arith.subf %26, %27 : vector<128x1xf32>
      %cst_13 = arith.constant 0.000000e+00 : f32
      %29 = vector.broadcast %cst_13 : f32 to vector<128x1xf32>
      %30 = arith.maximumf %28, %29 : vector<128x1xf32>
      %c0_14 = arith.constant 0 : index
      %c0_15 = arith.constant 0 : index
      %31 = vector.load %arg6[%c0_14, %c0_15] : memref<128x1xf32, #tpu.memory_space<vmem>>, vector<128x1xf32>
      %cst_16 = arith.constant 9.99999974E-6 : f32
      %32 = vector.broadcast %cst_16 : f32 to vector<128x1xf32>
      %33 = arith.addf %30, %32 : vector<128x1xf32>
      %34 = math.rsqrt %33 : vector<128x1xf32>
      %35 = arith.mulf %31, %34 : vector<128x1xf32>
      %c0_17 = arith.constant 0 : index
      %c0_18 = arith.constant 0 : index
      %36 = vector.load %arg7[%c0_17, %c0_18] : memref<128x1xf32, #tpu.memory_space<vmem>>, vector<128x1xf32>
      %37 = arith.mulf %21, %35 : vector<128x1xf32>
      %38 = arith.subf %36, %37 : vector<128x1xf32>
      %39 = vector.broadcast %35 : vector<128x1xf32> to vector<128x128xf32>
      %40 = arith.mulf %17, %39 : vector<128x128xf32>
      %c0_19 = arith.constant 0 : index
      %c0_20 = arith.constant 0 : index
      %41 = vector.load %arg4[%c0_19, %c0_20] : memref<128x128xf32, #tpu.memory_space<vmem>>, vector<128x128xf32>
      %42 = vector.broadcast %38 : vector<128x1xf32> to vector<128x128xf32>
      %43 = arith.addf %41, %42 : vector<128x128xf32>
      %44 = arith.addf %40, %43 : vector<128x128xf32>
      %cst_21 = arith.constant 0.000000e+00 : f32
      %45 = vector.broadcast %cst_21 : f32 to vector<128x128xf32>
      %46 = arith.maximumf %44, %45 : vector<128x128xf32>
      %cst_22 = arith.constant 0.000000e+00 : f32
      %47 = vector.shape_cast %2 : vector<1x128xi1> to vector<1x128xi1>
      %48 = vector.broadcast %47 : vector<1x128xi1> to vector<128x128xi1>
      %49 = vector.broadcast %cst_22 : f32 to vector<128x128xf32>
      %50 = arith.select %48, %46, %49 : vector<128x128xi1>, vector<128x128xf32>
      %c128_i32 = arith.constant 128 : i32
      %51 = arith.muli %arg1, %c128_i32 : i32
      %52 = tpu.assume_multiple %51, 128 : i32
      %53 = arith.truncf %50 : vector<128x128xf32> to vector<128x128xbf16>
      %54 = arith.index_cast %52 : i32 to index
      %c0_23 = arith.constant 0 : index
      %55 = vector.load %arg12[%54, %c0_23] : memref<256x128xbf16, #tpu.memory_space<vmem>>, vector<128x128xbf16>
      tpu.vector_store %arg12[%54, %c0_23], %53 {strides = array<i32>} : memref<256x128xbf16, #tpu.memory_space<vmem>>, vector<128x128xbf16>,
    } else {
    }
    %c1_i32 = arith.constant 1 : i32
    %13 = arith.cmpi eq, %arg0, %c1_i32 : i32
    %14 = arith.extui %13 : i1 to i32
    %cst_6 = arith.constant 0.0204081628 : f32
    %c0_i32_7 = arith.constant 0 : i32
    %15 = arith.cmpi ne, %14, %c0_i32_7 : i32
    scf.if %15 {
      %c0_8 = arith.constant 0 : index
      %c0_9 = arith.constant 0 : index
      %16 = vector.load %arg12[%c0_8, %c0_9] : memref<256x128xbf16, #tpu.memory_space<vmem>>, vector<256x128xbf16>
      %cst_10 = arith.constant dense<0.000000e+00> : vector<128x128xf32>
      %17 = tpu.matmul %9, %16, %cst_10 {dimension_numbers = #tpu.dot_dimension_numbers<[1], [0], [0], [1], [0, 0, 1, 1], [], []>} : vector<128x256xbf16>, vector<256x128xbf16>, vector<128x128xf32> -> vector<128x128xf32>
      %cst_11 = arith.constant dense<0.000000e+00> : vector<128xf32>
      %18 = vector.multi_reduction <add>, %17, %cst_11 [1] : vector<128x128xf32> to vector<128xf32>
      %19 = vector.shape_cast %18 : vector<128xf32> to vector<128x1xf32>
      %20 = vector.broadcast %cst_6 : f32 to vector<128x1xf32>
      %21 = arith.mulf %19, %20 : vector<128x1xf32>
      %22 = arith.mulf %17, %17 : vector<128x128xf32>
      %cst_12 = arith.constant dense<0.000000e+00> : vector<128xf32>
      %23 = vector.multi_reduction <add>, %22, %cst_12 [1] : vector<128x128xf32> to vector<128xf32>
      %24 = vector.shape_cast %23 : vector<128xf32> to vector<128x1xf32>
      %25 = vector.broadcast %cst_6 : f32 to vector<128x1xf32>
      %26 = arith.mulf %24, %25 : vector<128x1xf32>
      %27 = arith.mulf %21, %21 : vector<128x1xf32>
      %28 = arith.subf %26, %27 : vector<128x1xf32>
      %cst_13 = arith.constant 0.000000e+00 : f32
      %29 = vector.broadcast %cst_13 : f32 to vector<128x1xf32>
      %30 = arith.maximumf %28, %29 : vector<128x1xf32>
      %c0_14 = arith.constant 0 : index
      %c0_15 = arith.constant 0 : index
      %31 = vector.load %arg8[%c0_14, %c0_15] : memref<128x1xf32, #tpu.memory_space<vmem>>, vector<128x1xf32>
      %cst_16 = arith.constant 9.99999974E-6 : f32
      %32 = vector.broadcast %cst_16 : f32 to vector<128x1xf32>
      %33 = arith.addf %30, %32 : vector<128x1xf32>
      %34 = math.rsqrt %33 : vector<128x1xf32>
      %35 = arith.mulf %31, %34 : vector<128x1xf32>
      %c0_17 = arith.constant 0 : index
      %c0_18 = arith.constant 0 : index
      %36 = vector.load %arg9[%c0_17, %c0_18] : memref<128x1xf32, #tpu.memory_space<vmem>>, vector<128x1xf32>
      %37 = arith.mulf %21, %35 : vector<128x1xf32>
      %38 = arith.subf %36, %37 : vector<128x1xf32>
      %39 = vector.broadcast %35 : vector<128x1xf32> to vector<128x128xf32>
      %40 = arith.mulf %17, %39 : vector<128x128xf32>
      %41 = vector.broadcast %38 : vector<128x1xf32> to vector<128x128xf32>
      %42 = arith.addf %40, %41 : vector<128x128xf32>
      %c0_19 = arith.constant 0 : index
      %c0_20 = arith.constant 0 : index
      %43 = vector.load %arg10[%c0_19, %c0_20] : memref<128x128xf32, #tpu.memory_space<vmem>>, vector<128x128xf32>
      tpu.vector_store %arg10[%c0_19, %c0_20], %42 {strides = array<i32>} : memref<128x128xf32, #tpu.memory_space<vmem>>, vector<128x128xf32>,
    } else {
    }
    return
  }
  func.func @transform_0(%arg0: i32, %arg1: i32) -> (i32, i32) {
    %c0_i32 = arith.constant 0 : i32
    %c0_i32_0 = arith.constant 0 : i32
    %c0_i32_1 = arith.constant 0 : i32
    return %c0_i32, %c0_i32_0 : i32, i32
  }
  func.func @transform_1(%arg0: i32, %arg1: i32) -> (i32, i32) {
    %c0_i32 = arith.constant 0 : i32
    %c0_i32_0 = arith.constant 0 : i32
    %c0_i32_1 = arith.constant 0 : i32
    return %c0_i32, %c0_i32_0 : i32, i32
  }
  func.func @transform_2(%arg0: i32, %arg1: i32) -> (i32, i32) {
    %c1_i32 = arith.constant 1 : i32
    %0 = arith.subi %c1_i32, %arg0 : i32
    %1 = arith.muli %arg1, %0 : i32
    %c0_i32 = arith.constant 0 : i32
    %c0_i32_0 = arith.constant 0 : i32
    return %1, %c0_i32 : i32, i32
  }
  func.func @transform_3(%arg0: i32, %arg1: i32) -> (i32, i32, i32) {
    %c0_i32 = arith.constant 0 : i32
    %c0_i32_0 = arith.constant 0 : i32
    return %arg0, %arg1, %c0_i32 : i32, i32, i32
  }
  func.func @transform_4(%arg0: i32, %arg1: i32) -> (i32, i32) {
    %c1_i32 = arith.constant 1 : i32
    %0 = arith.subi %c1_i32, %arg0 : i32
    %1 = arith.muli %arg1, %0 : i32
    %c0_i32 = arith.constant 0 : i32
    %c0_i32_0 = arith.constant 0 : i32
    return %1, %c0_i32 : i32, i32
  }
  func.func @transform_5(%arg0: i32, %arg1: i32) -> (i32, i32) {
    %c1_i32 = arith.constant 1 : i32
    %0 = arith.subi %c1_i32, %arg0 : i32
    %1 = arith.muli %arg1, %0 : i32
    %c0_i32 = arith.constant 0 : i32
    %c0_i32_0 = arith.constant 0 : i32
    return %1, %c0_i32 : i32, i32
  }
  func.func @transform_6(%arg0: i32, %arg1: i32) -> (i32, i32) {
    %0 = arith.muli %arg1, %arg0 : i32
    %c0_i32 = arith.constant 0 : i32
    %c0_i32_0 = arith.constant 0 : i32
    return %0, %c0_i32 : i32, i32
  }
  func.func @transform_7(%arg0: i32, %arg1: i32) -> (i32, i32) {
    %0 = arith.muli %arg1, %arg0 : i32
    %c0_i32 = arith.constant 0 : i32
    %c0_i32_0 = arith.constant 0 : i32
    return %0, %c0_i32 : i32, i32
  }
  func.func @transform_8(%arg0: i32, %arg1: i32) -> (i32, i32) {
    %0 = arith.muli %arg1, %arg0 : i32
    %c0_i32 = arith.constant 0 : i32
    %c0_i32_0 = arith.constant 0 : i32
    return %0, %c0_i32 : i32, i32
  }
}

</mosaic_0001>

<bundles_post_ra>
// kernel: fused_forward.1
= control target key start
LH: loop header
LB: loop body
LE: loop exit
PB: predicated region body
PF: predicated region fallthrough
CT: control target
= control target key end

     0   :  { %s3161_s27 = smov 0   ;;  %s3163_s28 = smov 0   ;;  %s4064_s0 = inlined_call_operand.vmem [shape: f32[256,1], index: 0, kind: input, shape index: {}]   ;;  %s4065_s1 = inlined_call_operand.vmem [shape: f32[256,128], index: 1, kind: input, shape index: {}]   ;;  %s4066_s2 = inlined_call_operand.vmem [shape: f32[256,128], index: 2, kind: input, shape index: {}]   ;;  %s4067_s3 = inlined_call_operand.vmem [shape: bf16[2,256,256], index: 3, kind: input, shape index: {}]   ;;  %s4068_s4 = inlined_call_operand.vmem [shape: f32[256,1], index: 4, kind: input, shape index: {}]   ;;  %s4069_s5 = inlined_call_operand.vmem [shape: f32[256,1], index: 5, kind: input, shape index: {}]   ;;  %s4070_s6 = inlined_call_operand.vmem [shape: f32[256,1], index: 6, kind: input, shape index: {}]   ;;  %s4071_s7 = inlined_call_operand.vmem [shape: f32[256,1], index: 7, kind: input, shape index: {}]   ;;  %s4072_s8 = inlined_call_operand.vmem [shape: f32[256,128], index: 8, kind: output, shape index: {}]  }
   0x1   :  { %s3165_s29 = smov 0   ;;  %s3167_s30 = smov 0  }
   0x2   :  { %s3169_s9 = smov 0  }
   0x3 LB: > { %4081 = sst [smem:[#allocation4_spill]] %s3103_s29  ;;  %s27_s10 = sadd.s32 1, %s3103_s29  ;;  %s3111_s9 = sphi %s3169_s9, %s18_s9   ;;  %s3107_s30 = sphi %s3167_s30, %s4094_s30   ;;  %s3103_s29 = sphi %s3165_s29, %s4093_s29   ;;  %s3099_s28 = sphi %s3163_s28, %s4092_s28   ;;  %s3095_s27 = sphi %s3161_s27, %s4091_s27  }
   0x4   : > { %4082 = sst [smem:[#allocation5_spill]] %s3107_s30  ;;  %s30_s11 = sadd.s32 1, %s3107_s30 }
   0x5   : > { %p28_p0 = scmp.ge.s32.totalorder %s27_s10, 2  ;;  %p2585_p1 = scmp.ge.s32.totalorder %s3111_s9, 1 }
   0x6   : > { %p371_p2 = scmp.lt.s32.totalorder %s3111_s9, 5 }
   0x7   : > { %s4096_s10 = smov (%p28_p0, %s27_s10), 0  ;;  %s4098_s11 = smov (!%p28_p0, %s30_s11), %s3107_s30 }
   0x8   : > { %4083 = sst [smem:[#allocation6_spill]] %s4096_s10  ;;  %p372_p3 = pnand %p2585_p1, %p371_p2 }
   0x9   : > { %p32_p4 = scmp.ge.s32.totalorder %s4098_s11, 2 }
   0xa   : > { %375 = sbr.rel (%p372_p3) target bundleno = 1532 (0x5fc), region = 52 }
   0xb   : > { %s4100_s11 = smov (%p32_p4, %s4098_s11), 0 }
   0xc   : > { %4084 = sst [smem:[#allocation7_spill]] %s4100_s11 }
  0x11   : > { %s444_s12 = ssub.s32 1, %s3099_s28  ;;  %s2588_s13 = sshll.u32 %s3095_s27, 4  ;;  %v510_v0 = vlaneseq }
  0x12   : > { %s445_s14 = smul.u32 %s3095_s27, %s444_s12  ;;  %p455_p5 = scmp.lt.s32.totalorder %s3099_s28, 1 }
  0x13   : > { %p457_p6 = scmp.lt.s32.totalorder %s2588_s13, 31  ;;  %s485_s15 = smul.u32 %s3095_s27, %s3099_s28  ;;  %v3201_v1 = vand.u32 127, %v510_v0 }
  0x14   : > { %s2586_s16 = sshll.u32 %s445_s14, 4  ;;  %p513_p7 = scmp.eq.s32.totalorder %s3099_s28, 0 }
  0x15   : > { %p447_p8 = scmp.lt.s32.totalorder %s2586_s16, 31  ;;  %s2596_s17 = sshll.u32 %s485_s15, 4  ;;  %vm512_vm0 = vcmp.lt.s32.totalorder %v3201_v1, 49 }
  0x16   : > { %s456_s18 = scalar_select %p455_p5, %s3099_s28, 1 }
  0x17   : > { %s4102_s16 = smov (!%p447_p8, %s2586_s16), 31  ;;  %s4104_s13 = smov (!%p457_p6, %s2588_s13), 31 }
  0x18   : > { %s2587_s19 = sshll.u32 %s4102_s16, 3  ;;  %s2590_s20 = sshll.u32 %s456_s18, 6 }
  0x19   : > { %s3209_s23 = scalar_lea.vmem %s4066_s2, %s2587_s19  ;;  %s2589_s24 = sshll.u32 %s4104_s13, 1 }
  0x1a   : > { %s461_s25 = sadd.s32 %s2590_s20, %s2589_s24  ;;  %s3214_s14 = scalar_lea.vmem %s4068_s4, %s2587_s19 }
  0x1b   : > { %s2591_s15 = sshll.u32 %s461_s25, 2  ;;  %s3219_s30 = scalar_lea.vmem %s4069_s5, %s2587_s19 }
  0x1c   : > { %s3224_s29 = scalar_lea.vmem %s4067_s3, %s2591_s15  ;;  %p487_p9 = scmp.lt.s32.totalorder %s2596_s17, 31 }
  0x1d   : > { %p514_p10 = scmp.eq.s32.totalorder %s3095_s27, 0 }
  0x1e   : > { %s4106_s17 = smov (!%p487_p9, %s2596_s17), 31 }
  0x1f   : > { %p515_p11 = pnand %p514_p10, %p513_p7  ;;  %s2597_s13 = sshll.u32 %s4106_s17, 3 }
  0x20   : > { %s3232_s22 = scalar_lea.vmem %s4070_s6, %s2597_s13  ;;  %s3237_s11 = scalar_lea.vmem %s4071_s7, %s2597_s13  ;;  %v521_v2 = vld [vmem:[%s4064_s0 + $0x10] sm:$0xff] (!%p515_p11)  ;;  %v519_v3 = vld [vmem:[%s4064_s0] sm:$0xff] (!%p515_p11)  ;;  %v522_v4 = vld [vmem:[%s4064_s0 + $0x18] sm:$0xff] (!%p515_p11)  ;;  %v3113_v5 = vmov (!%p515_p11), 0  }
  0x21   : > { %s3242_s26 = scalar_lea.vmem %s4072_s8, %s2597_s13  ;;  %518 = sbr.rel (%p515_p11) target bundleno = 254 (0xfe), region = 56  ;;  %2876 = vset.pattern.permute.xlu1 (!%p515_p11), %v3113_v5  ;;  %2875 = vset.pattern.permute.xlu0 (!%p515_p11), %v3113_v5  ;;  %v2604_v6 = vmul.f32 (!%p515_p11), -1.442695, %v521_v2  ;;  %v2602_v7 = vmul.f32 (!%p515_p11), -1.442695, %v519_v3  ;;  %v520_v9 = vld [vmem:[%s4064_s0 + $0x8] sm:$0xff] (!%p515_p11) }
  0x22   : > { %v2605_v8 = vmul.f32 (!%p515_p11), -1.442695, %v522_v4  ;;  %v524_v10 = vld [vmem:[%s4064_s0 + $0x28] sm:$0xff] (!%p515_p11)  ;;  %v523_v11 = vld [vmem:[%s4064_s0 + $0x20] sm:$0xff] (!%p515_p11)  ;;  %v2603_v12 = vmul.f32 (!%p515_p11), -1.442695, %v520_v9 }
  0x23   : > { %2877 = vpow2.f32 (!%p515_p11), %v2604_v6  ;;  %v2607_v13 = vmul.f32 (!%p515_p11), -1.442695, %v524_v10  ;;  %v2606_v14 = vmul.f32 (!%p515_p11), -1.442695, %v523_v11  ;;  %v526_v15 = vld [vmem:[%s4064_s0 + $0x38] sm:$0xff] (!%p515_p11)  ;;  %v525_v16 = vld [vmem:[%s4064_s0 + $0x30] sm:$0xff] (!%p515_p11) }
  0x24   : > { %2879 = vpow2.f32 (!%p515_p11), %v2602_v7  ;;  %v528_v17 = vld [vmem:[%s4064_s0 + $0x48] sm:$0xff] (!%p515_p11)  ;;  %v2609_v18 = vmul.f32 (!%p515_p11), -1.442695, %v526_v15  ;;  %v2608_v19 = vmul.f32 (!%p515_p11), -1.442695, %v525_v16  ;;  %v527_v20 = vld [vmem:[%s4064_s0 + $0x40] sm:$0xff] (!%p515_p11) }
  0x25   : > { %2881 = vpow2.f32 (!%p515_p11), %v2605_v8  ;;  %v530_v21 = vld [vmem:[%s4064_s0 + $0x58] sm:$0xff] (!%p515_p11)  ;;  %v2611_v22 = vmul.f32 (!%p515_p11), -1.442695, %v528_v17  ;;  %v529_v23 = vld [vmem:[%s4064_s0 + $0x50] sm:$0xff] (!%p515_p11)  ;;  %v2610_v24 = vmul.f32 (!%p515_p11), -1.442695, %v527_v20 }
  0x26   : > { %2883 = vpow2.f32 (!%p515_p11), %v2603_v12  ;;  %v532_v25 = vld [vmem:[%s4064_s0 + $0x68] sm:$0xff] (!%p515_p11)  ;;  %v2613_v26 = vmul.f32 (!%p515_p11), -1.442695, %v530_v21  ;;  %v2612_v27 = vmul.f32 (!%p515_p11), -1.442695, %v529_v23  ;;  %v531_v48 = vld [vmem:[%s4064_s0 + $0x60] sm:$0xff] (!%p515_p11) }
  0x27   : > { %2885 = vpow2.f32 (!%p515_p11), %v2607_v13  ;;  %v2615_v28 = vmul.f32 (!%p515_p11), -1.442695, %v532_v25  ;;  %v534_v51 = vld [vmem:[%s4064_s0 + $0x78] sm:$0xff] (!%p515_p11)  ;;  %v533_v54 = vld [vmem:[%s4064_s0 + $0x70] sm:$0xff] (!%p515_p11)  ;;  %v2614_v57 = vmul.f32 (!%p515_p11), -1.442695, %v531_v48 }
  0x28   : > { %2887 = vpow2.f32 %v2606_v14  ;;  %v536_v58 = vld [vmem:[%s4064_s0 + $0x88] sm:$0xff]  ;;  %v2617_v61 = vmul.f32 -1.442695, %v534_v51  ;;  %v535_v62 = vld [vmem:[%s4064_s0 + $0x80] sm:$0xff]  ;;  %v2616_v0 = vmul.f32 -1.442695, %v533_v54 }
  0x29   : > { %2889 = vpow2.f32 %v2609_v18  ;;  %v538_v2 = vld [vmem:[%s4064_s0 + $0x98] sm:$0xff]  ;;  %v2619_v4 = vmul.f32 -1.442695, %v536_v58  ;;  %v537_v5 = vld [vmem:[%s4064_s0 + $0x90] sm:$0xff]  ;;  %v2618_v7 = vmul.f32 -1.442695, %v535_v62 }
  0x2a   : > { %2891 = vpow2.f32 %v2608_v19  ;;  %v540_v8 = vld [vmem:[%s4064_s0 + $0xa8] sm:$0xff]  ;;  %v2621_v10 = vmul.f32 -1.442695, %v538_v2  ;;  %v539_v11 = vld [vmem:[%s4064_s0 + $0xa0] sm:$0xff]  ;;  %v2620_v13 = vmul.f32 -1.442695, %v537_v5 }
  0x2b   : > { %2893 = vpow2.f32 %v2611_v22  ;;  %v542_v14 = vld [vmem:[%s4064_s0 + $0xb8] sm:$0xff]  ;;  %v2623_v16 = vmul.f32 -1.442695, %v540_v8  ;;  %v541_v17 = vld [vmem:[%s4064_s0 + $0xb0] sm:$0xff]  ;;  %v2622_v19 = vmul.f32 -1.442695, %v539_v11 }
  0x2c   : > { %2895 = vpow2.f32 %v2610_v24  ;;  %v2625_v21 = vmul.f32 -1.442695, %v542_v14  ;;  %v2624_v23 = vmul.f32 -1.442695, %v541_v17 }
  0x2d   : > { %v2878_v29 = vpop.eup %2877  ;;  %2897 = vpow2.f32 %v2613_v26 }
  0x2e   : > { %v2880_v30 = vpop.eup %2879  ;;  %v649_v31 = vadd.f32 1.0, %v2878_v29  ;;  %2899 = vpow2.f32 %v2612_v27  ;;  %v544_v27 = vld [vmem:[%s4064_s0 + $0xc8] sm:$0xff] }
  0x2f   : > { %v2882_v32 = vpop.eup %2881  ;;  %v647_v33 = vadd.f32 1.0, %v2880_v30  ;;  %2901 = vpow2.f32 %v2615_v28 }
  0x30   : > { %v2884_v34 = vpop.eup %2883  ;;  %2903 = vrcp.f32 %v649_v31  ;;  %v650_v35 = vadd.f32 1.0, %v2882_v32  ;;  %v543_v31 = vld [vmem:[%s4064_s0 + $0xc0] sm:$0xff] }
  0x31   : > { %v2886_v36 = vpop.eup %2885  ;;  %2905 = vrcp.f32 %v647_v33  ;;  %v648_v37 = vadd.f32 1.0, %v2884_v34  ;;  %v2627_v34 = vmul.f32 -1.442695, %v544_v27 }
  0x32   : > { %v2888_v38 = vpop.eup %2887  ;;  %2907 = vrcp.f32 %v650_v35  ;;  %v652_v39 = vadd.f32 1.0, %v2886_v36 }
  0x33   : > { %v2890_v40 = vpop.eup %2889  ;;  %2909 = vrcp.f32 %v648_v37  ;;  %v651_v41 = vadd.f32 1.0, %v2888_v38 }
  0x34   : > { %v2892_v42 = vpop.eup %2891  ;;  %2911 = vrcp.f32 %v652_v39  ;;  %v654_v43 = vadd.f32 1.0, %v2890_v40  ;;  %v2626_v39 = vmul.f32 -1.442695, %v543_v31 }
  0x35   : > { %v2894_v44 = vpop.eup %2893  ;;  %2913 = vrcp.f32 %v651_v41  ;;  %v653_v45 = vadd.f32 1.0, %v2892_v42 }
  0x36   : > { %v2896_v46 = vpop.eup %2895  ;;  %2915 = vrcp.f32 %v654_v43  ;;  %v656_v47 = vadd.f32 1.0, %v2894_v44 }
  0x37   : > { %v2898_v49 = vpop.eup %2897  ;;  %2917 = vrcp.f32 %v653_v45  ;;  %v655_v50 = vadd.f32 1.0, %v2896_v46 }
  0x38   : > { %v2900_v52 = vpop.eup %2899  ;;  %2919 = vrcp.f32 %v656_v47  ;;  %v658_v53 = vadd.f32 1.0, %v2898_v49 }
  0x39   : > { %v2902_v55 = vpop.eup %2901  ;;  %2921 = vrcp.f32 %v655_v50  ;;  %v657_v56 = vadd.f32 1.0, %v2900_v52  ;;  %v546_v50 = vld [vmem:[%s4064_s0 + $0xd8] sm:$0xff] }
  0x3a   : > { %v2904_v59 = vpop.eup %2903  ;;  %2923 = vrcp.f32 %v658_v53  ;;  %v660_v60 = vadd.f32 1.0, %v2902_v55  ;;  %v545_v53 = vld [vmem:[%s4064_s0 + $0xd0] sm:$0xff]  ;;  %v548_v55 = vld [vmem:[%s4064_s0 + $0xe8] sm:$0xff] }
  0x3b   : > { %v2906_v63 = vpop.eup %2905  ;;  %787 = vperm.xlu1 %2876, %v2904_v59   ;;  %2925 = vrcp.f32 %v657_v56  ;;  %v2629_v56 = vmul.f32 -1.442695, %v546_v50  ;;  %v2628_v59 = vmul.f32 -1.442695, %v545_v53  ;;  %v2631_v62 = vmul.f32 -1.442695, %v548_v55 }
  0x3c   : > { %v2908_v3 = vpop.eup %2907  ;;  %777 = vperm.xlu0 %2875, %v2906_v63   ;;  %2927 = vrcp.f32 %v660_v60  ;;  %v550_v60 = vld [vmem:[%s4064_s0 + $0xf8] sm:$0xff]  ;;  %v549_v63 = vld [vmem:[%s4064_s0 + $0xf0] sm:$0xff] }
  0x3d   : > { %v2910_v6 = vpop.eup %2909  ;;  %2929 = vpow2.f32 %v2614_v57  ;;  %v547_v57 = vld [vmem:[%s4064_s0 + $0xe0] sm:$0xff] }
  0x3e   : > { %v2912_v9 = vpop.eup %2911  ;;  %2931 = vpow2.f32 %v2617_v61  ;;  %v2630_v2 = vmul.f32 -1.442695, %v547_v57  ;;  %v750_v57 = vld [vmem:[%s4065_s1 + $0x38] sm:$0xff] }
  0x3f   : > { %v2914_v12 = vpop.eup %2913  ;;  %792 = vperm.xlu1 %2876, %v2908_v3   ;;  %2933 = vpow2.f32 %v2616_v0 }
  0x40   : > { %v2916_v15 = vpop.eup %2915  ;;  %782 = vperm.xlu0 %2875, %v2910_v6   ;;  %2935 = vpow2.f32 %v2619_v4  ;;  %v2633_v4 = vmul.f32 -1.442695, %v550_v60  ;;  %v2632_v6 = vmul.f32 -1.442695, %v549_v63 }
  0x41   : > { %v2918_v18 = vpop.eup %2917  ;;  %2937 = vpow2.f32 %v2618_v7 }
  0x42   : > { %v2920_v20 = vpop.eup %2919  ;;  %2939 = vpow2.f32 %v2621_v10 }
  0x43   : > { %v2922_v22 = vpop.eup %2921  ;;  %802 = vperm.xlu1 %2876, %v2912_v9   ;;  %2941 = vpow2.f32 %v2620_v13 }
  0x44   : > { %v2924_v24 = vpop.eup %2923  ;;  %797 = vperm.xlu0 %2875, %v2914_v12   ;;  %2943 = vpow2.f32 %v2623_v16 }
  0x45   : > { %v2926_v25 = vpop.eup %2925  ;;  %2945 = vpow2.f32 %v2622_v19 }
  0x46   : > { %v2928_v26 = vpop.eup %2927  ;;  %2947 = vpow2.f32 %v2625_v21 }
  0x47   : > { %v2930_v28 = vpop.eup %2929  ;;  %812 = vperm.xlu1 %2876, %v2916_v15   ;;  %2949 = vpow2.f32 %v2624_v23 }
  0x48   : > { %v2932_v29 = vpop.eup %2931  ;;  %807 = vperm.xlu0 %2875, %v2918_v18   ;;  %v659_v30 = vadd.f32 1.0, %v2930_v28 }
  0x49   : > { %v2934_v32 = vpop.eup %2933  ;;  %v662_v33 = vadd.f32 1.0, %v2932_v29 }
  0x4a   : > { %v2936_v35 = vpop.eup %2935  ;;  %2951 = vrcp.f32 %v659_v30  ;;  %v661_v36 = vadd.f32 1.0, %v2934_v32 }
  0x4b   : > { %v2938_v37 = vpop.eup %2937  ;;  %822 = vperm.xlu1 %2876, %v2920_v20   ;;  %2953 = vrcp.f32 %v662_v33  ;;  %v664_v38 = vadd.f32 1.0, %v2936_v35 }
  0x4c   : > { %v2940_v40 = vpop.eup %2939  ;;  %817 = vperm.xlu0 %2875, %v2922_v22   ;;  %2955 = vrcp.f32 %v661_v36  ;;  %v663_v41 = vadd.f32 1.0, %v2938_v37 }
  0x4d   : > { %v2942_v42 = vpop.eup %2941  ;;  %v666_v43 = vadd.f32 1.0, %v2940_v40  ;;  %2957 = vpow2.f32 %v2627_v34  ;;  %v746_v40 = vld [vmem:[%s4065_s1 + $0x18] sm:$0xff] }
  0x4e   : > { %v2944_v44 = vpop.eup %2943  ;;  %2959 = vrcp.f32 %v664_v38  ;;  %v665_v45 = vadd.f32 1.0, %v2942_v42  ;;  %v744_v42 = vld [vmem:[%s4065_s1 + $0x8] sm:$0xff] }
  0x4f   : > { %v2946_v46 = vpop.eup %2945  ;;  %832 = vperm.xlu1 %2876, %v2924_v24   ;;  %v668_v47 = vadd.f32 1.0, %v2944_v44  ;;  %2961 = vpow2.f32 %v2626_v39  ;;  %v745_v39 = vld [vmem:[%s4065_s1 + $0x10] sm:$0xff] }
  0x50   : > { %v2948_v48 = vpop.eup %2947  ;;  %827 = vperm.xlu0 %2875, %v2926_v25   ;;  %2963 = vrcp.f32 %v663_v41  ;;  %v667_v49 = vadd.f32 1.0, %v2946_v46  ;;  %v743_v41 = vld [vmem:[%s4065_s1] sm:$0xff] }
  0x51   : > { %v2950_v51 = vpop.eup %2949  ;;  %2965 = vrcp.f32 %v666_v43  ;;  %v670_v52 = vadd.f32 1.0, %v2948_v48 }
  0x52   : > { %2967 = vrcp.f32 %v665_v45  ;;  %v669_v54 = vadd.f32 1.0, %v2950_v51  ;;  %v747_v51 = vld [vmem:[%s4065_s1 + $0x20] sm:$0xff] }
  0x53   : > { %842 = vperm.xlu1 %2876, %v2928_v26   ;;  %2969 = vrcp.f32 %v668_v47 }
  0x54   : > { %v2952_v58 = vpop.eup %2951  ;;  %2971 = vrcp.f32 %v667_v49  ;;  %v748_v49 = vld [vmem:[%s4065_s1 + $0x28] sm:$0xff] }
  0x55   : > { %v2954_v61 = vpop.eup %2953  ;;  %837 = vperm.xlu0 %2875, %v2952_v58   ;;  %2973 = vrcp.f32 %v670_v52  ;;  %v749_v58 = vld [vmem:[%s4065_s1 + $0x30] sm:$0xff] }
  0x56   : > { %v2956_v0 = vpop.eup %2955  ;;  %2975 = vrcp.f32 %v669_v54 }
  0x57   : > { %v2958_v3 = vpop.eup %2957  ;;  %852 = vperm.xlu1 %2876, %v2954_v61   ;;  %2977 = vpow2.f32 %v2629_v56 }
  0x58   : > { %v2960_v5 = vpop.eup %2959  ;;  %2979 = vpow2.f32 %v2628_v59  ;;  %v672_v9 = vadd.f32 1.0, %v2958_v3 }
  0x59   : > { %v2962_v7 = vpop.eup %2961  ;;  %847 = vperm.xlu0 %2875, %v2956_v0   ;;  %2981 = vpow2.f32 %v2631_v62  ;;  %v752_v0 = vld [vmem:[%s4065_s1 + $0x48] sm:$0xff] }
  0x5a   : > { %v2964_v8 = vpop.eup %2963  ;;  %2983 = vpow2.f32 %v2630_v2  ;;  %v671_v12 = vadd.f32 1.0, %v2962_v7  ;;  %v751_v2 = vld [vmem:[%s4065_s1 + $0x40] sm:$0xff] }
  0x5b   : > { %v2966_v10 = vpop.eup %2965  ;;  %862 = vperm.xlu1 %2876, %v2960_v5   ;;  %2985 = vpow2.f32 %v2633_v4 }
  0x5c   : > { %v2968_v11 = vpop.eup %2967  ;;  %2987 = vpow2.f32 %v2632_v6 }
  0x5d   : > { %v2970_v13 = vpop.eup %2969  ;;  %857 = vperm.xlu0 %2875, %v2964_v8   ;;  %2989 = vrcp.f32 %v672_v9  ;;  %v754_v8 = vld [vmem:[%s4065_s1 + $0x58] sm:$0xff]  ;;  %v753_v9 = vld [vmem:[%s4065_s1 + $0x50] sm:$0xff] }
  0x5e   : > { %v2972_v14 = vpop.eup %2971  ;;  %2991 = vrcp.f32 %v671_v12 }
  0x5f   : > { %v2974_v15 = vpop.eup %2973  ;;  %872 = vperm.xlu1 %2876, %v2966_v10  }
  0x60   : > { %v2976_v16 = vpop.eup %2975 }
  0x61   : > { %v2978_v17 = vpop.eup %2977  ;;  %867 = vperm.xlu0 %2875, %v2968_v11  }
  0x62   : > { %v2980_v18 = vpop.eup %2979  ;;  %v674_v19 = vadd.f32 1.0, %v2978_v17 }
  0x63   : > { %v2982_v20 = vpop.eup %2981  ;;  %882 = vperm.xlu1 %2876, %v2970_v13   ;;  %v673_v21 = vadd.f32 1.0, %v2980_v18  ;;  %v755_v18 = vld [vmem:[%s4065_s1 + $0x60] sm:$0xff] }
  0x64   : > { %v2984_v22 = vpop.eup %2983  ;;  %2993 = vrcp.f32 %v674_v19  ;;  %v676_v23 = vadd.f32 1.0, %v2982_v20 }
  0x65   : > { %v2986_v24 = vpop.eup %2985  ;;  %877 = vperm.xlu0 %2875, %v2972_v14   ;;  %2995 = vrcp.f32 %v673_v21  ;;  %v675_v25 = vadd.f32 1.0, %v2984_v22  ;;  %v758_v21 = vld [vmem:[%s4065_s1 + $0x78] sm:$0xff] }
  0x66   : > { %v2988_v26 = vpop.eup %2987  ;;  %2997 = vrcp.f32 %v676_v23  ;;  %v678_v27 = vadd.f32 1.0, %v2986_v24  ;;  %v757_v24 = vld [vmem:[%s4065_s1 + $0x70] sm:$0xff] }
  0x67   : > { %892 = vperm.xlu1 %2876, %v2974_v15   ;;  %v2990_v28 = vpop.eup %2989  ;;  %2999 = vrcp.f32 %v675_v25  ;;  %v677_v29 = vadd.f32 1.0, %v2988_v26  ;;  %v756_v15 = vld [vmem:[%s4065_s1 + $0x68] sm:$0xff] }
  0x68   : > { %v2992_v30 = vpop.eup %2991  ;;  %3001 = vrcp.f32 %v678_v27 }
  0x69   : > { %887 = vperm.xlu0 %2875, %v2976_v16   ;;  %3003 = vrcp.f32 %v677_v29 }
  0x6b   : > { %902 = vperm.xlu1 %2876, %v2990_v28   ;;  %v760_v28 = vld [vmem:[%s4065_s1 + $0x88] sm:$0xff] }
  0x6d   : > { %897 = vperm.xlu0 %2875, %v2992_v30  }
  0x6e   : > { %v2994_v31 = vpop.eup %2993 }
  0x6f   : > { %v2996_v32 = vpop.eup %2995  ;;  %912 = vperm.xlu1 %2876, %v2994_v31   ;;  %v759_v31 = vld [vmem:[%s4065_s1 + $0x80] sm:$0xff] }
  0x70   : > { %v2998_v33 = vpop.eup %2997 }
  0x71   : > { %907 = vperm.xlu0 %2875, %v2996_v32   ;;  %v3000_v34 = vpop.eup %2999 }
  0x72   : > { %v3002_v35 = vpop.eup %3001 }
  0x73   : > { %922 = vperm.xlu1 %2876, %v2998_v33   ;;  %v3004_v36 = vpop.eup %3003 }
  0x75   : > { %917 = vperm.xlu0 %2875, %v3000_v34  }
  0x77   : > { %932 = vperm.xlu1 %2876, %v3002_v35   ;;  %v762_v35 = vld [vmem:[%s4065_s1 + $0x98] sm:$0xff] }
  0x79   : > { %927 = vperm.xlu0 %2875, %v3004_v36  }
  0xba   : > { %v788_v37 = vpop.permute.xlu1 %787 }
  0xbb   : > { %v778_v38 = vpop.permute.xlu0 %777  ;;  %v937_v44 = vmul.f32 %v788_v37, %v745_v39 }
  0xbc   : > { %v935_v47 = vmul.f32 %v778_v38, %v743_v41  ;;  %v761_v38 = vld [vmem:[%s4065_s1 + $0x90] sm:$0xff] }
  0xbe   : > { %v793_v43 = vpop.permute.xlu1 %792 }
  0xbf   : > { %v938_v45 = vmul.f32 %v793_v43, %v746_v40  ;;  %v783_v46 = vpop.permute.xlu0 %782 }
  0xc0   : > { %v936_v48 = vmul.f32 %v783_v46, %v744_v42  ;;  %v764_v42 = vld [vmem:[%s4065_s1 + $0xa8] sm:$0xff] }
  0xc1   : > { %v968_v50 = vpack.c.bf16 %v938_v45, %v937_v44  ;;  %v763_v45 = vld [vmem:[%s4065_s1 + $0xa0] sm:$0xff] }
  0xc2   : > { %v967_v52 = vpack.c.bf16 %v936_v48, %v935_v47  ;;  %v803_v53 = vpop.permute.xlu1 %802 }
  0xc3   : > { %984 = vst [vmem:[#allocation2 + $0x8] sm:$0xff] %v968_v50  ;;  %v940_v54 = vmul.f32 %v803_v53, %v748_v49  ;;  %v798_v55 = vpop.permute.xlu0 %797  ;;  %v766_v49 = vld [vmem:[%s4065_s1 + $0xb8] sm:$0xff] }
  0xc4   : > { %983 = vst [vmem:[#allocation2] sm:$0xff] %v967_v52  ;;  %v939_v56 = vmul.f32 %v798_v55, %v747_v51  ;;  %v765_v52 = vld [vmem:[%s4065_s1 + $0xb0] sm:$0xff] }
  0xc6   : > { %v969_v59 = vpack.c.bf16 %v940_v54, %v939_v56  ;;  %v813_v60 = vpop.permute.xlu1 %812  ;;  %v768_v56 = vld [vmem:[%s4065_s1 + $0xc8] sm:$0xff] }
  0xc7   : > { %v942_v61 = vmul.f32 %v813_v60, %v750_v57  ;;  %v808_v62 = vpop.permute.xlu0 %807 }
  0xc8   : > { %985 = vst [vmem:[#allocation2 + $0x10] sm:$0xff] %v969_v59  ;;  %v941_v63 = vmul.f32 %v808_v62, %v749_v58  ;;  %v767_v59 = vld [vmem:[%s4065_s1 + $0xc0] sm:$0xff] }
  0xca   : > { %v970_v3 = vpack.c.bf16 %v942_v61, %v941_v63  ;;  %v823_v4 = vpop.permute.xlu1 %822  ;;  %v770_v63 = vld [vmem:[%s4065_s1 + $0xd8] sm:$0xff] }
  0xcb   : > { %v944_v5 = vmul.f32 %v823_v4, %v752_v0  ;;  %v818_v6 = vpop.permute.xlu0 %817 }
  0xcc   : > { %986 = vst [vmem:[#allocation2 + $0x18] sm:$0xff] %v970_v3  ;;  %v943_v7 = vmul.f32 %v818_v6, %v751_v2  ;;  %v769_v3 = vld [vmem:[%s4065_s1 + $0xd0] sm:$0xff] }
  0xce   : > { %v971_v10 = vpack.c.bf16 %v944_v5, %v943_v7  ;;  %v833_v11 = vpop.permute.xlu1 %832  ;;  %v772_v7 = vld [vmem:[%s4065_s1 + $0xe8] sm:$0xff] }
  0xcf   : > { %v946_v12 = vmul.f32 %v833_v11, %v754_v8  ;;  %v828_v13 = vpop.permute.xlu0 %827 }
  0xd0   : > { %987 = vst [vmem:[#allocation2 + $0x20] sm:$0xff] %v971_v10  ;;  %v945_v14 = vmul.f32 %v828_v13, %v753_v9  ;;  %v771_v10 = vld [vmem:[%s4065_s1 + $0xe0] sm:$0xff] }
  0xd2   : > { %v972_v16 = vpack.c.bf16 %v946_v12, %v945_v14  ;;  %v843_v17 = vpop.permute.xlu1 %842  ;;  %v774_v14 = vld [vmem:[%s4065_s1 + $0xf8] sm:$0xff] }
  0xd3   : > { %v948_v19 = vmul.f32 %v843_v17, %v756_v15  ;;  %v773_v17 = vld [vmem:[%s4065_s1 + $0xf0] sm:$0xff] }
  0xd4   : > { %988 = vst [vmem:[#allocation2 + $0x28] sm:$0xff] %v972_v16  ;;  %v838_v20 = vpop.permute.xlu0 %837 }
  0xd5   : > { %v947_v22 = vmul.f32 %v838_v20, %v755_v18 }
  0xd6   : > { %v853_v23 = vpop.permute.xlu1 %852 }
  0xd7   : > { %v973_v25 = vpack.c.bf16 %v948_v19, %v947_v22  ;;  %v950_v26 = vmul.f32 %v853_v23, %v758_v21 }
  0xd8   : > { %v848_v27 = vpop.permute.xlu0 %847 }
  0xd9   : > { %989 = vst [vmem:[#allocation2 + $0x30] sm:$0xff] %v973_v25  ;;  %v949_v29 = vmul.f32 %v848_v27, %v757_v24 }
  0xda   : > { %v863_v30 = vpop.permute.xlu1 %862 }
  0xdb   : > { %v974_v32 = vpack.c.bf16 %v950_v26, %v949_v29  ;;  %v952_v33 = vmul.f32 %v863_v30, %v760_v28 }
  0xdc   : > { %v858_v34 = vpop.permute.xlu0 %857 }
  0xdd   : > { %990 = vst [vmem:[#allocation2 + $0x38] sm:$0xff] %v974_v32  ;;  %v951_v36 = vmul.f32 %v858_v34, %v759_v31 }
  0xde   : > { %v873_v37 = vpop.permute.xlu1 %872 }
  0xdf   : > { %v975_v39 = vpack.c.bf16 %v952_v33, %v951_v36  ;;  %v954_v40 = vmul.f32 %v873_v37, %v762_v35 }
  0xe0   : > { %v868_v41 = vpop.permute.xlu0 %867 }
  0xe1   : > { %991 = vst [vmem:[#allocation2 + $0x40] sm:$0xff] %v975_v39  ;;  %v953_v43 = vmul.f32 %v868_v41, %v761_v38 }
  0xe2   : > { %v883_v44 = vpop.permute.xlu1 %882 }
  0xe3   : > { %v976_v46 = vpack.c.bf16 %v954_v40, %v953_v43  ;;  %v956_v47 = vmul.f32 %v883_v44, %v764_v42 }
  0xe4   : > { %v878_v48 = vpop.permute.xlu0 %877 }
  0xe5   : > { %992 = vst [vmem:[#allocation2 + $0x48] sm:$0xff] %v976_v46  ;;  %v955_v50 = vmul.f32 %v878_v48, %v763_v45 }
  0xe6   : > { %v893_v51 = vpop.permute.xlu1 %892 }
  0xe7   : > { %v977_v53 = vpack.c.bf16 %v956_v47, %v955_v50  ;;  %v958_v54 = vmul.f32 %v893_v51, %v766_v49 }
  0xe8   : > { %v888_v55 = vpop.permute.xlu0 %887 }
  0xe9   : > { %993 = vst [vmem:[#allocation2 + $0x50] sm:$0xff] %v977_v53  ;;  %v957_v57 = vmul.f32 %v888_v55, %v765_v52 }
  0xea   : > { %v903_v58 = vpop.permute.xlu1 %902 }
  0xeb   : > { %v978_v60 = vpack.c.bf16 %v958_v54, %v957_v57  ;;  %v960_v61 = vmul.f32 %v903_v58, %v768_v56 }
  0xec   : > { %v898_v62 = vpop.permute.xlu0 %897 }
  0xed   : > { %994 = vst [vmem:[#allocation2 + $0x58] sm:$0xff] %v978_v60  ;;  %v959_v0 = vmul.f32 %v898_v62, %v767_v59 }
  0xee   : > { %v913_v2 = vpop.permute.xlu1 %912 }
  0xef   : > { %v979_v4 = vpack.c.bf16 %v960_v61, %v959_v0  ;;  %v962_v5 = vmul.f32 %v913_v2, %v770_v63 }
  0xf0   : > { %v908_v6 = vpop.permute.xlu0 %907 }
  0xf1   : > { %995 = vst [vmem:[#allocation2 + $0x60] sm:$0xff] %v979_v4  ;;  %v961_v8 = vmul.f32 %v908_v6, %v769_v3 }
  0xf2   : > { %v923_v9 = vpop.permute.xlu1 %922 }
  0xf3   : > { %v980_v11 = vpack.c.bf16 %v962_v5, %v961_v8  ;;  %v964_v12 = vmul.f32 %v923_v9, %v772_v7 }
  0xf4   : > { %v918_v13 = vpop.permute.xlu0 %917 }
  0xf5   : > { %996 = vst [vmem:[#allocation2 + $0x68] sm:$0xff] %v980_v11  ;;  %v963_v15 = vmul.f32 %v918_v13, %v771_v10 }
  0xf6   : > { %v933_v16 = vpop.permute.xlu1 %932 }
  0xf7   : > { %v981_v18 = vpack.c.bf16 %v964_v12, %v963_v15  ;;  %v966_v19 = vmul.f32 %v933_v16, %v774_v14 }
  0xf8   : > { %v928_v20 = vpop.permute.xlu0 %927 }
  0xf9   : > { %997 = vst [vmem:[#allocation2 + $0x70] sm:$0xff] %v981_v18  ;;  %v965_v21 = vmul.f32 %v928_v20, %v773_v17 }
  0xfb   : > { %v982_v22 = vpack.c.bf16 %v966_v19, %v965_v21 }
  0xfd   : > { %998 = vst [vmem:[#allocation2 + $0x78] sm:$0xff] %v982_v22 }
  0xfe PF: > { %v3437_v23 = vld [vmem:[%s3224_s29] sm:$0xff]  ;;  %v3440_v24 = vld [vmem:[%s3224_s29 + $0x8] sm:$0xff]  ;;  %v3443_v25 = vld [vmem:[%s3224_s29 + $0x10] sm:$0xff]  ;;  %p2634_p12 = scmp.ne.s32.totalorder %s3099_s28, 0 }
  0xff   : > { %v3446_v26 = vld [vmem:[%s3224_s29 + $0x18] sm:$0xff]  ;;  %v3449_v27 = vld [vmem:[%s3224_s29 + $0x20] sm:$0xff]  ;;  %v3452_v28 = vld [vmem:[%s3224_s29 + $0x28] sm:$0xff]  ;;  %v2636_v42 = vcombine.high (!%p2634_p12), %v3437_v23, %v3440_v24  ;;  %v2635_v57 = vcombine.low (!%p2634_p12), %v3437_v23, %v3440_v24 }
 0x100   : > { %v3455_v29 = vld [vmem:[%s3224_s29 + $0x30] sm:$0xff]  ;;  %v3458_v30 = vld [vmem:[%s3224_s29 + $0x38] sm:$0xff]  ;;  %v3461_v31 = vld [vmem:[%s3224_s29 + $0x40] sm:$0xff]  ;;  %1017 = sbr.rel (%p2634_p12) target bundleno = 896 (0x380), region = 60  ;;  %v2638_v59 = vcombine.high (!%p2634_p12), %v3443_v25, %v3446_v26  ;;  %v2637_v61 = vcombine.low (!%p2634_p12), %v3443_v25, %v3446_v26  ;;  %v2640_v63 = vcombine.high (!%p2634_p12), %v3449_v27, %v3452_v28  ;;  %v2639_v2 = vcombine.low (!%p2634_p12), %v3449_v27, %v3452_v28 }
 0x101   : > { %4085 = vst [vmem:[#allocation8_spill] sm:$0xff] %v3455_v29  ;;  %v3464_v32 = vld [vmem:[%s3224_s29 + $0x48] sm:$0xff]  ;;  %v3467_v33 = vld [vmem:[%s3224_s29 + $0x50] sm:$0xff]  ;;  %v3470_v34 = vld [vmem:[%s3224_s29 + $0x58] sm:$0xff]  ;;  %1146 = vmatprep.mubr.bf16.mxu0 (!%p2634_p12), %v2636_v42  ;;  %v2642_v4 = vcombine.high (!%p2634_p12), %v3455_v29, %v3458_v30  ;;  %v2641_v6 = vcombine.low (!%p2634_p12), %v3455_v29, %v3458_v30 }
 0x102   : > { %v3473_v35 = vld [vmem:[%s3224_s29 + $0x60] sm:$0xff]  ;;  %v3476_v36 = vld [vmem:[%s3224_s29 + $0x68] sm:$0xff]  ;;  %v3479_v37 = vld [vmem:[%s3224_s29 + $0x70] sm:$0xff]  ;;  %v2644_v43 = vcombine.high (!%p2634_p12), %v3461_v31, %v3464_v32  ;;  %v2643_v58 = vcombine.low (!%p2634_p12), %v3461_v31, %v3464_v32  ;;  %v2646_v60 = vcombine.high (!%p2634_p12), %v3467_v33, %v3470_v34  ;;  %v2645_v62 = vcombine.low (!%p2634_p12), %v3467_v33, %v3470_v34 }
 0x103   : > { %4086 = vst [vmem:[#allocation9_spill] sm:$0xff] %v3479_v37  ;;  %v3482_v38 = vld [vmem:[%s3224_s29 + $0x78] sm:$0xff]  ;;  %v1026_v39 = vld [vmem:[#allocation2 + $0x40] sm:$0xff] (!%p2634_p12)  ;;  %v1027_v41 = vld [vmem:[#allocation2 + $0x48] sm:$0xff] (!%p2634_p12)  ;;  %v2648_v0 = vcombine.high (!%p2634_p12), %v3473_v35, %v3476_v36  ;;  %v2647_v3 = vcombine.low (!%p2634_p12), %v3473_v35, %v3476_v36  ;;  %s2651_s29 = sshll.u32 (!%p2634_p12), %s3095_s27, 7 }
 0x104   : > { %4087 = vst [vmem:[#allocation10_spill] sm:$0xff] %v3482_v38  ;;  %v1018_v40 = vld [vmem:[#allocation2] sm:$0xff] (!%p2634_p12)  ;;  %2672 = vmatprep.subr.bf16.mxu0 (!%p2634_p12), %v1026_v39  ;;  %2800 = vmatprep.subr.bf16.mxu1 (!%p2634_p12), %v1026_v39  ;;  %v1019_v44 = vld [vmem:[#allocation2 + $0x8] sm:$0xff] (!%p2634_p12)  ;;  %v1028_v45 = vld [vmem:[#allocation2 + $0x50] sm:$0xff] (!%p2634_p12)  ;;  %v2650_v5 = vcombine.high (!%p2634_p12), %v3479_v37, %v3482_v38  ;;  %v2649_v7 = vcombine.low (!%p2634_p12), %v3479_v37, %v3482_v38 }
 0x105   : > { %2673 = vmatpush3.bf16.msra.mxu0 (!%p2634_p12), %v1018_v40  ;;  %2808 = vmatpush3.bf16.msra.mxu1 (!%p2634_p12), %v1018_v40  ;;  %v1020_v46 = vld [vmem:[#allocation2 + $0x10] sm:$0xff] (!%p2634_p12)  ;;  %v1029_v47 = vld [vmem:[#allocation2 + $0x58] sm:$0xff] (!%p2634_p12)  ;;  %v1030_v49 = vld [vmem:[#allocation2 + $0x60] sm:$0xff] (!%p2634_p12) }
 0x106   : > { %2674 = vmatprep.subr.bf16.mxu0 (!%p2634_p12), %v1027_v41  ;;  %2801 = vmatprep.subr.bf16.mxu1 (!%p2634_p12), %v1027_v41  ;;  %v1021_v48 = vld [vmem:[#allocation2 + $0x18] sm:$0xff] (!%p2634_p12)  ;;  %v1022_v50 = vld [vmem:[#allocation2 + $0x20] sm:$0xff] (!%p2634_p12)  ;;  %v1031_v51 = vld [vmem:[#allocation2 + $0x68] sm:$0xff] (!%p2634_p12) }
 0x107   : > { %1178 = vmatprep.mubr.bf16.mxu1 %v2644_v43  ;;  %v1023_v52 = vld [vmem:[#allocation2 + $0x28] sm:$0xff]  ;;  %v1032_v53 = vld [vmem:[#allocation2 + $0x70] sm:$0xff]  ;;  %v1033_v55 = vld [vmem:[#allocation2 + $0x78] sm:$0xff] }
 0x108   : > { %v1024_v54 = vld [vmem:[#allocation2 + $0x30] sm:$0xff]  ;;  %v1025_v56 = vld [vmem:[#allocation2 + $0x38] sm:$0xff]  ;;  %v1380_v37 = vld [vmem:[%s3214_s14 + $0x48] sm:$0xff] }
 0x109   : > { %2675 = vmatpush3.bf16.msra.mxu0 %v1019_v44  ;;  %2809 = vmatpush3.bf16.msra.mxu1 %v1019_v44 }
 0x10a   : > { %2676 = vmatprep.subr.bf16.mxu0 %v1028_v45  ;;  %2802 = vmatprep.subr.bf16.mxu1 %v1028_v45 }
 0x10d   : > { %2677 = vmatpush3.bf16.msra.mxu0 %v1020_v46  ;;  %2810 = vmatpush3.bf16.msra.mxu1 %v1020_v46 }
 0x10e   : > { %2678 = vmatprep.subr.bf16.mxu0 %v1029_v47  ;;  %2803 = vmatprep.subr.bf16.mxu1 %v1029_v47 }
 0x111   : > { %2679 = vmatpush3.bf16.msra.mxu0 %v1021_v48  ;;  %2811 = vmatpush3.bf16.msra.mxu1 %v1021_v48 }
 0x112   : > { %2680 = vmatprep.subr.bf16.mxu0 %v1030_v49  ;;  %2804 = vmatprep.subr.bf16.mxu1 %v1030_v49 }
 0x115   : > { %2681 = vmatpush3.bf16.msra.mxu0 %v1022_v50  ;;  %2812 = vmatpush3.bf16.msra.mxu1 %v1022_v50 }
 0x116   : > { %2682 = vmatprep.subr.bf16.mxu0 %v1031_v51  ;;  %2805 = vmatprep.subr.bf16.mxu1 %v1031_v51 }
 0x119   : > { %2683 = vmatpush3.bf16.msra.mxu0 %v1023_v52  ;;  %2813 = vmatpush3.bf16.msra.mxu1 %v1023_v52 }
 0x11a   : > { %2684 = vmatprep.subr.bf16.mxu0 %v1032_v53  ;;  %2806 = vmatprep.subr.bf16.mxu1 %v1032_v53 }
 0x11d   : > { %2685 = vmatpush3.bf16.msra.mxu0 %v1024_v54  ;;  %2814 = vmatpush3.bf16.msra.mxu1 %v1024_v54 }
 0x11e   : > { %2686 = vmatprep.subr.bf16.mxu0 %v1033_v55  ;;  %2807 = vmatprep.subr.bf16.mxu1 %v1033_v55 }
 0x121   : > { %2687 = vmatpush3.bf16.msra.mxu0 %v1025_v56  ;;  %2815 = vmatpush3.bf16.msra.mxu1 %v1025_v56 }
 0x124   : > { %1147 = vmatmul.mubr.bf16.vlgmr.msra.gmra.mrb[0].mxu0 %v2635_v57  ;;  %1179 = vmatmul.mubr.bf16.vlgmr.msra.gmra.mrb[0].mxu1 %v2643_v58 }
 0x125   : > { %1154 = vmatprep.mubr.bf16.mxu0 %v2638_v59  ;;  %1186 = vmatprep.mubr.bf16.mxu1 %v2646_v60 }
 0x12c   : > { %1155 = vmatmul.mubr.bf16.gmra.mrb[4].mxu0 %v2637_v61  ;;  %1187 = vmatmul.mubr.bf16.gmra.mrb[4].mxu1 %v2645_v62 }
 0x12d   : > { %1162 = vmatprep.mubr.bf16.mxu0 %v2640_v63  ;;  %1194 = vmatprep.mubr.bf16.mxu1 %v2648_v0 }
 0x134   : > { %1163 = vmatmul.mubr.bf16.gmra.mrb[8].mxu0 %v2639_v2  ;;  %1195 = vmatmul.mubr.bf16.gmra.mrb[8].mxu1 %v2647_v3 }
 0x135   : > { %1170 = vmatprep.mubr.bf16.mxu0 %v2642_v4  ;;  %1202 = vmatprep.mubr.bf16.mxu1 %v2650_v5 }
 0x13c   : > { %1171 = vmatmul.mubr.bf16.gmra.mrb[12].mxu0 %v2641_v6  ;;  %1203 = vmatmul.mubr.bf16.gmra.mrb[12].mxu1 %v2649_v7 }
 0x1f7   : > { %v2688_v8 = vpop.f32.mrb[0].mxu0  ;;  %v2712_v9 = vpop.f32.mrb[0].mxu1 }
 0x1f8   : > { %v2689_v10 = vpop.f32.mrb[1].mxu0  ;;  %v2713_v11 = vpop.f32.mrb[1].mxu1 }
 0x1f9   : > { %v3517_v12 = vadd.f32 %v2689_v10, %v2688_v8  ;;  %v3519_v13 = vadd.f32 %v2713_v11, %v2712_v9  ;;  %v2691_v14 = vpop.f32.mrb[2].mxu0  ;;  %v2715_v15 = vpop.f32.mrb[2].mxu1 }
 0x1fa   : > { %v2692_v16 = vpop.f32.mrb[3].mxu0  ;;  %v2716_v17 = vpop.f32.mrb[3].mxu1 }
 0x1fb   : > { %v3521_v18 = vadd.f32 %v2692_v16, %v2691_v14  ;;  %v3523_v19 = vadd.f32 %v2716_v17, %v2715_v15  ;;  %1211 = vadd.xlane.f32.xlu0 %v3517_v12  ;;  %v1259_v50 = vmul.f32 %v3517_v12, %v3517_v12  ;;  %v1267_v55 = vmul.f32 %v3519_v13, %v3519_v13 }
 0x1fd   : > { %1229 = vadd.xlane.f32.xlu1 %v3523_v19  ;;  %v1260_v20 = vmul.f32 %v3521_v18, %v3521_v18  ;;  %v1268_v47 = vmul.f32 %v3523_v19, %v3523_v19 }
 0x1ff   : > { %1227 = vadd.xlane.f32.xlu0 %v3519_v13  ;;  %v2694_v21 = vpop.f32.mrb[4].mxu0  ;;  %v2718_v22 = vpop.f32.mrb[4].mxu1 }
 0x200   : > { %v2695_v39 = vpop.f32.mrb[5].mxu0  ;;  %v2719_v40 = vpop.f32.mrb[5].mxu1 }
 0x201   : > { %1277 = vadd.xlane.f32.xlu1 %v1260_v20  ;;  %v3530_v41 = vadd.f32 %v2695_v39, %v2694_v21  ;;  %v2697_v42 = vpop.f32.mrb[6].mxu0  ;;  %v3532_v43 = vadd.f32 %v2719_v40, %v2718_v22  ;;  %v2721_v44 = vpop.f32.mrb[6].mxu1 }
 0x202   : > { %v2698_v45 = vpop.f32.mrb[7].mxu0  ;;  %v2722_v46 = vpop.f32.mrb[7].mxu1 }
 0x203   : > { %1213 = vadd.xlane.f32.xlu0 %v3521_v18  ;;  %v3537_v48 = vadd.f32 %v2698_v45, %v2697_v42  ;;  %v3539_v49 = vadd.f32 %v2722_v46, %v2721_v44  ;;  %v1261_v0 = vmul.f32 %v3530_v41, %v3530_v41  ;;  %v1269_v15 = vmul.f32 %v3532_v43, %v3532_v43 }
 0x204   : > { %v3114_v42 = vmov 0  }
 0x205   : > { %1293 = vadd.xlane.f32.xlu1 %v1268_v47  ;;  %v1262_v6 = vmul.f32 %v3537_v48, %v3537_v48  ;;  %v1270_v20 = vmul.f32 %v3539_v49, %v3539_v49  ;;  %3005 = vset.pattern.permute.xlu0 %v3114_v42 }
 0x206   : > { %3006 = vset.pattern.permute.xlu1 %v3114_v42 }
 0x207   : > { %1275 = vadd.xlane.f32.xlu0 %v1259_v50  ;;  %v2700_v51 = vpop.f32.mrb[8].mxu0  ;;  %v2724_v52 = vpop.f32.mrb[8].mxu1 }
 0x208   : > { %v2701_v53 = vpop.f32.mrb[9].mxu0  ;;  %v2725_v54 = vpop.f32.mrb[9].mxu1 }
 0x209   : > { %1215 = vadd.xlane.f32.xlu1 %v3530_v41  ;;  %v3546_v56 = vadd.f32 %v2701_v53, %v2700_v51  ;;  %v2703_v57 = vpop.f32.mrb[10].mxu0  ;;  %v3548_v58 = vadd.f32 %v2725_v54, %v2724_v52  ;;  %v2727_v59 = vpop.f32.mrb[10].mxu1 }
 0x20a   : > { %v2704_v60 = vpop.f32.mrb[11].mxu0  ;;  %v2728_v61 = vpop.f32.mrb[11].mxu1 }
 0x20b   : > { %1291 = vadd.xlane.f32.xlu0 %v1267_v55  ;;  %v3550_v62 = vadd.f32 %v2704_v60, %v2703_v57  ;;  %v3552_v63 = vadd.f32 %v2728_v61, %v2727_v59  ;;  %v1263_v21 = vmul.f32 %v3546_v56, %v3546_v56  ;;  %v1271_v39 = vmul.f32 %v3548_v58, %v3548_v58 }
 0x20d   : > { %1217 = vadd.xlane.f32.xlu1 %v3537_v48  ;;  %v1264_v22 = vmul.f32 %v3550_v62, %v3550_v62  ;;  %v1272_v40 = vmul.f32 %v3552_v63, %v3552_v63 }
 0x20f   : > { %1231 = vadd.xlane.f32.xlu0 %v3532_v43  ;;  %v2706_v2 = vpop.f32.mrb[12].mxu0  ;;  %v2730_v3 = vpop.f32.mrb[12].mxu1 }
 0x210   : > { %v2707_v4 = vpop.f32.mrb[13].mxu0  ;;  %v2731_v5 = vpop.f32.mrb[13].mxu1 }
 0x211   : > { %1233 = vadd.xlane.f32.xlu1 %v3539_v49  ;;  %v3561_v7 = vadd.f32 %v2707_v4, %v2706_v2  ;;  %v2709_v8 = vpop.f32.mrb[14].mxu0  ;;  %v3563_v9 = vadd.f32 %v2731_v5, %v2730_v3  ;;  %v2733_v10 = vpop.f32.mrb[14].mxu1 }
 0x212   : > { %v2710_v11 = vpop.f32.mrb[15].mxu0  ;;  %v2734_v14 = vpop.f32.mrb[15].mxu1 }
 0x213   : > { %1279 = vadd.xlane.f32.xlu0 %v1261_v0  ;;  %v3567_v16 = vadd.f32 %v2710_v11, %v2709_v8  ;;  %v3569_v17 = vadd.f32 %v2734_v14, %v2733_v10  ;;  %v1265_v44 = vmul.f32 %v3561_v7, %v3561_v7  ;;  %v1273_v46 = vmul.f32 %v3563_v9, %v3563_v9 }
 0x215   : > { %1281 = vadd.xlane.f32.xlu1 %v1262_v6  ;;  %v1266_v45 = vmul.f32 %v3567_v16, %v3567_v16  ;;  %v1274_v47 = vmul.f32 %v3569_v17, %v3569_v17 }
 0x217   : > { %1295 = vadd.xlane.f32.xlu0 %v1269_v15 }
 0x219   : > { %1297 = vadd.xlane.f32.xlu1 %v1270_v20 }
 0x21b   : > { %1219 = vadd.xlane.f32.xlu0 %v3546_v56 }
 0x21d   : > { %1221 = vadd.xlane.f32.xlu1 %v3550_v62 }
 0x21f   : > { %1235 = vadd.xlane.f32.xlu0 %v3548_v58 }
 0x221   : > { %1237 = vadd.xlane.f32.xlu1 %v3552_v63 }
 0x223   : > { %1283 = vadd.xlane.f32.xlu0 %v1263_v21 }
 0x225   : > { %1285 = vadd.xlane.f32.xlu1 %v1264_v22 }
 0x227   : > { %1299 = vadd.xlane.f32.xlu0 %v1271_v39 }
 0x229   : > { %1301 = vadd.xlane.f32.xlu1 %v1272_v40 }
 0x22b   : > { %1223 = vadd.xlane.f32.xlu0 %v3561_v7 }
 0x22d   : > { %1225 = vadd.xlane.f32.xlu1 %v3567_v16 }
 0x22f   : > { %1239 = vadd.xlane.f32.xlu0 %v3563_v9 }
 0x231   : > { %1241 = vadd.xlane.f32.xlu1 %v3569_v17 }
 0x233   : > { %1287 = vadd.xlane.f32.xlu0 %v1265_v44 }
 0x235   : > { %1289 = vadd.xlane.f32.xlu1 %v1266_v45 }
 0x237   : > { %1303 = vadd.xlane.f32.xlu0 %v1273_v46 }
 0x239   : > { %1305 = vadd.xlane.f32.xlu1 %v1274_v47 }
 0x288   : > { %v1212_v50 = vpop.xlane.xlu0 %1211 }
 0x289   : > { %v3599_v57 = vmul.f32 0.020408163, %v1212_v50 }
 0x28a   : > { %v1230_v51 = vpop.xlane.xlu1 %1229 }
 0x28b   : > { %v3597_v54 = vmul.f32 0.020408163, %v1230_v51  ;;  %v1323_v5 = vmul.f32 %v3599_v57, %v3599_v57 }
 0x28c   : > { %v1228_v52 = vpop.xlane.xlu0 %1227 }
 0x28d   : > { %v1332_v61 = vmul.f32 %v3597_v54, %v3597_v54  ;;  %v3609_v11 = vmul.f32 0.020408163, %v1228_v52 }
 0x28e   : > { %v1278_v53 = vpop.xlane.xlu1 %1277 }
 0x28f   : > { %v1308_v0 = vmul.f32 0.020408163, %v1278_v53  ;;  %v1331_v42 = vmul.f32 %v3609_v11, %v3609_v11 }
 0x290   : > { %v1214_v55 = vpop.xlane.xlu0 %1213 }
 0x291   : > { %v3601_v59 = vmul.f32 0.020408163, %v1214_v55 }
 0x292   : > { %v1294_v60 = vpop.xlane.xlu1 %1293 }
 0x293   : > { %v1324_v2 = vmul.f32 %v3601_v59, %v3601_v59  ;;  %v1316_v3 = vmul.f32 0.020408163, %v1294_v60 }
 0x294   : > { %v1276_v4 = vpop.xlane.xlu0 %1275 }
 0x295   : > { %v1340_v6 = vsub.f32 %v1308_v0, %v1324_v2  ;;  %v1348_v8 = vsub.f32 %v1316_v3, %v1332_v61  ;;  %v1307_v10 = vmul.f32 0.020408163, %v1276_v4 }
 0x296   : > { %v1216_v14 = vpop.xlane.xlu1 %1215 }
 0x297   : > { %v1356_v15 = vmax.f32 %v1340_v6, 0.0  ;;  %v1364_v20 = vmax.f32 %v1348_v8, 0.0  ;;  %v1339_v21 = vsub.f32 %v1307_v10, %v1323_v5  ;;  %v3613_v50 = vmul.f32 0.020408163, %v1216_v14 }
 0x298   : > { %v1292_v22 = vpop.xlane.xlu0 %1291 }
 0x299   : > { %v1388_v39 = vadd.f32 1e-05, %v1356_v15  ;;  %v1355_v40 = vmax.f32 %v1339_v21, 0.0  ;;  %v1315_v44 = vmul.f32 0.020408163, %v1292_v22  ;;  %v1325_v61 = vmul.f32 %v3613_v50, %v3613_v50  ;;  %v1372_v21 = vld [vmem:[%s3214_s14 + $0x8] sm:$0xff] }
 0x29a   : > { %v1218_v45 = vpop.xlane.xlu1 %1217  ;;  %v1396_v46 = vadd.f32 1e-05, %v1364_v20 }
 0x29b   : > { %3007 = vrsqrt.f32 %v1388_v39  ;;  %v1387_v47 = vadd.f32 1e-05, %v1355_v40  ;;  %v1347_v51 = vsub.f32 %v1315_v44, %v1331_v42  ;;  %v3615_v53 = vmul.f32 0.020408163, %v1218_v45  ;;  %v1371_v44 = vld [vmem:[%s3214_s14] sm:$0xff] }
 0x29c   : > { %v1232_v52 = vpop.xlane.xlu0 %1231 }
 0x29d   : > { %3009 = vrsqrt.f32 %v1387_v47  ;;  %v1363_v55 = vmax.f32 %v1347_v51, 0.0  ;;  %v1326_v3 = vmul.f32 %v3615_v53, %v3615_v53  ;;  %v3621_v4 = vmul.f32 0.020408163, %v1232_v52 }
 0x29e   : > { %v1234_v60 = vpop.xlane.xlu1 %1233  ;;  %3011 = vrsqrt.f32 %v1396_v46 }
 0x29f   : > { %v1395_v0 = vadd.f32 1e-05, %v1363_v55  ;;  %v3623_v5 = vmul.f32 0.020408163, %v1234_v60  ;;  %v1333_v22 = vmul.f32 %v3621_v4, %v3621_v4 }
 0x2a0   : > { %v1280_v2 = vpop.xlane.xlu0 %1279 }
 0x2a1   : > { %v1309_v6 = vmul.f32 0.020408163, %v1280_v2  ;;  %3013 = vrsqrt.f32 %v1395_v0  ;;  %v1334_v39 = vmul.f32 %v3623_v5, %v3623_v5 }
 0x2a2   : > { %v1282_v8 = vpop.xlane.xlu1 %1281 }
 0x2a3   : > { %v1310_v10 = vmul.f32 0.020408163, %v1282_v8  ;;  %v1341_v14 = vsub.f32 %v1309_v6, %v1325_v61 }
 0x2a4   : > { %v1296_v15 = vpop.xlane.xlu0 %1295 }
 0x2a5   : > { %v3008_v20 = vpop.eup %3007  ;;  %v1342_v40 = vsub.f32 %v1310_v10, %v1326_v3  ;;  %v1317_v42 = vmul.f32 0.020408163, %v1296_v15  ;;  %v1357_v55 = vmax.f32 %v1341_v14, 0.0  ;;  %v1379_v10 = vld [vmem:[%s3214_s14 + $0x40] sm:$0xff] }
 0x2a6   : > { %v1298_v45 = vpop.xlane.xlu1 %1297  ;;  %v1420_v52 = vmul.f32 %v3008_v20, %v1372_v21 }
 0x2a7   : > { %v3010_v46 = vpop.eup %3009  ;;  %v1358_v47 = vmax.f32 %v1342_v40, 0.0  ;;  %v1318_v51 = vmul.f32 0.020408163, %v1298_v45  ;;  %v1349_v6 = vsub.f32 %v1317_v42, %v1333_v22  ;;  %v1389_v40 = vadd.f32 1e-05, %v1357_v55  ;;  %v1436_v22 = vld [vmem:[%s3219_s30 + $0x8] sm:$0xff] }
 0x2a8   : > { %v1220_v60 = vpop.xlane.xlu0 %1219  ;;  %v1419_v61 = vmul.f32 %v3010_v46, %v1371_v44  ;;  %v3012_v0 = vpop.eup %3011  ;;  %v1452_v29 = vmul.f32 %v1420_v52, %v3601_v59 }
 0x2a9   : > { %v1390_v2 = vadd.f32 1e-05, %v1358_v47  ;;  %v1350_v8 = vsub.f32 %v1318_v51, %v1334_v39  ;;  %v1428_v20 = vmul.f32 %v3012_v0, %v1380_v37  ;;  %v1365_v14 = vmax.f32 %v1349_v6, 0.0  ;;  %v1444_v0 = vld [vmem:[%s3219_s30 + $0x48] sm:$0xff] }
 0x2aa   : > { %v1222_v38 = vpop.xlane.xlu1 %1221  ;;  %1485 = vperm.xlu0 %3005, %v1419_v61   ;;  %v3637_v46 = vmul.f32 0.020408163, %v1220_v60  ;;  %v1468_v59 = vsub.f32 %v1436_v22, %v1452_v29  ;;  %v1451_v6 = vmul.f32 %v1419_v61, %v3599_v57  ;;  %v1435_v60 = vld [vmem:[%s3219_s30] sm:$0xff] }
 0x2ab   : > { %3015 = vrsqrt.f32 %v1390_v2  ;;  %v1366_v3 = vmax.f32 %v1350_v8, 0.0  ;;  %v3014_v15 = vpop.eup %3013  ;;  %v3634_v44 = vmul.f32 0.020408163, %v1222_v38  ;;  %v1460_v51 = vmul.f32 %v1428_v20, %v3597_v54 }
 0x2ac   : > { %v1236_v45 = vpop.xlane.xlu0 %1235  ;;  %v1427_v39 = vmul.f32 %v3014_v15, %v1379_v10  ;;  %v1397_v37 = vadd.f32 1e-05, %v1365_v14  ;;  %v1327_v29 = vmul.f32 %v3637_v46, %v3637_v46 }
 0x2ad   : > { %v1398_v21 = vadd.f32 1e-05, %v1366_v3  ;;  %v1328_v38 = vmul.f32 %v3634_v44, %v3634_v44  ;;  %v1374_v3 = vld [vmem:[%s3214_s14 + $0x18] sm:$0xff]  ;;  %v3650_v10 = vmul.f32 0.020408163, %v1236_v45  ;;  %v1476_v15 = vsub.f32 %v1444_v0, %v1460_v51 }
 0x2ae   : > { %v1238_v42 = vpop.xlane.xlu1 %1237  ;;  %1530 = vperm.xlu0 %3005, %v1428_v20   ;;  %1525 = vperm.xlu1 %3006, %v1427_v39   ;;  %v1459_v22 = vmul.f32 %v1427_v39, %v3609_v11 }
 0x2af   : > { %3017 = vrsqrt.f32 %v1398_v21  ;;  %v3642_v55 = vmul.f32 0.020408163, %v1238_v42  ;;  %v1467_v21 = vsub.f32 %v1435_v60, %v1451_v6  ;;  %v1335_v51 = vmul.f32 %v3650_v10, %v3650_v10 }
 0x2b0   : > { %v1284_v47 = vpop.xlane.xlu0 %1283  ;;  %3019 = vrsqrt.f32 %v1389_v40 }
 0x2b1   : > { %3021 = vrsqrt.f32 %v1397_v37  ;;  %v1336_v20 = vmul.f32 %v3642_v55, %v3642_v55  ;;  %v1311_v14 = vmul.f32 0.020408163, %v1284_v47 }
 0x2b2   : > { %v1286_v2 = vpop.xlane.xlu1 %1285  ;;  %1602 = vperm.xlu0 %3005, %v1468_v59   ;;  %1490 = vperm.xlu1 %3006, %v1420_v52   ;;  %v1443_v52 = vld [vmem:[%s3219_s30 + $0x40] sm:$0xff] }
 0x2b3   : > { %v1312_v8 = vmul.f32 0.020408163, %v1286_v2  ;;  %v1382_v2 = vld [vmem:[%s3214_s14 + $0x58] sm:$0xff]  ;;  %v1343_v0 = vsub.f32 %v1311_v14, %v1327_v29  ;;  %v1475_v11 = vsub.f32 %v1443_v52, %v1459_v22 }
 0x2b4   : > { %v1300_v54 = vpop.xlane.xlu0 %1299 }
 0x2b5   : > { %v3016_v40 = vpop.eup %3015  ;;  %v1344_v57 = vsub.f32 %v1312_v8, %v1328_v38  ;;  %v1319_v37 = vmul.f32 0.020408163, %v1300_v54 }
 0x2b6   : > { %v1302_v61 = vpop.xlane.xlu1 %1301  ;;  %1642 = vperm.xlu0 %3005, %v1476_v15   ;;  %v3655_v42 = vmul.f32 %v3016_v40, %v1374_v3  ;;  %1597 = vperm.xlu1 %3006, %v1467_v21   ;;  %v1359_v21 = vmax.f32 %v1343_v0, 0.0 }
 0x2b7   : > { %v1360_v45 = vmax.f32 %v1344_v57, 0.0  ;;  %v1320_v59 = vmul.f32 0.020408163, %v1302_v61  ;;  %v1373_v57 = vld [vmem:[%s3214_s14 + $0x10] sm:$0xff]  ;;  %v1438_v61 = vld [vmem:[%s3219_s30 + $0x18] sm:$0xff]  ;;  %v1351_v54 = vsub.f32 %v1319_v37, %v1335_v51 }
 0x2b8   : > { %v1224_v47 = vpop.xlane.xlu0 %1223  ;;  %v1454_v3 = vmul.f32 %v3655_v42, %v3615_v53  ;;  %v1391_v51 = vadd.f32 1e-05, %v1359_v21 }
 0x2b9   : > { %v3018_v38 = vpop.eup %3017  ;;  %v1392_v8 = vadd.f32 1e-05, %v1360_v45  ;;  %v1352_v6 = vsub.f32 %v1320_v59, %v1336_v20 }
 0x2ba   : > { %v1226_v60 = vpop.xlane.xlu1 %1225  ;;  %v1430_v39 = vmul.f32 %v3018_v38, %v1382_v2  ;;  %v3020_v15 = vpop.eup %3019  ;;  %1637 = vperm.xlu1 %3006, %v1475_v11   ;;  %v1470_v59 = vsub.f32 %v1438_v61, %v1454_v3  ;;  %v1381_v2 = vld [vmem:[%s3214_s14 + $0x50] sm:$0xff]  ;;  %v1446_v38 = vld [vmem:[%s3219_s30 + $0x58] sm:$0xff] }
 0x2bb   : > { %3023 = vrsqrt.f32 %v1392_v8  ;;  %v1368_v40 = vmax.f32 %v1352_v6, 0.0  ;;  %v3665_v14 = vmul.f32 0.020408163, %v1226_v60  ;;  %v1421_v45 = vmul.f32 %v3020_v15, %v1373_v57  ;;  %v3022_v52 = vpop.eup %3021  ;;  %v1376_v15 = vld [vmem:[%s3214_s14 + $0x28] sm:$0xff] }
 0x2bc   : > { %1540 = vperm.xlu0 %3005, %v1430_v39   ;;  %v1240_v20 = vpop.xlane.xlu0 %1239  ;;  %v1462_v53 = vmul.f32 %v1430_v39, %v3623_v5  ;;  %v1367_v8 = vmax.f32 %v1351_v54, 0.0  ;;  %v1429_v60 = vmul.f32 %v3022_v52, %v1381_v2  ;;  %v3675_v39 = vmul.f32 0.020408163, %v1224_v47  ;;  %v1437_v52 = vld [vmem:[%s3219_s30 + $0x10] sm:$0xff]  ;;  %v1384_v2 = vld [vmem:[%s3214_s14 + $0x68] sm:$0xff] }
 0x2bd   : > { %v1400_v29 = vadd.f32 1e-05, %v1368_v40  ;;  %v1330_v37 = vmul.f32 %v3665_v14, %v3665_v14 }
 0x2be   : > { %v1242_v22 = vpop.xlane.xlu1 %1241  ;;  %1495 = vperm.xlu1 %3006, %v1421_v45   ;;  %v1478_v11 = vsub.f32 %v1446_v38, %v1462_v53  ;;  %v1399_v5 = vadd.f32 1e-05, %v1367_v8  ;;  %v1329_v47 = vmul.f32 %v3675_v39, %v3675_v39  ;;  %v3685_v8 = vmul.f32 0.020408163, %v1240_v20 }
 0x2bf   : > { %3025 = vrsqrt.f32 %v1400_v29  ;;  %v3672_v0 = vmul.f32 0.020408163, %v1242_v22  ;;  %v1453_v29 = vmul.f32 %v1421_v45, %v3613_v50 }
 0x2c0   : > { %1612 = vperm.xlu0 %3005, %v1470_v59   ;;  %v1288_v40 = vpop.xlane.xlu0 %1287  ;;  %3027 = vrsqrt.f32 %v1391_v51 }
 0x2c1   : > { %v1338_v61 = vmul.f32 %v3672_v0, %v3672_v0  ;;  %3029 = vrsqrt.f32 %v1399_v5  ;;  %v1313_v51 = vmul.f32 0.020408163, %v1288_v40  ;;  %v1469_v45 = vsub.f32 %v1437_v52, %v1453_v29  ;;  %v1375_v29 = vld [vmem:[%s3214_s14 + $0x20] sm:$0xff] }
 0x2c2   : > { %v1290_v6 = vpop.xlane.xlu1 %1289  ;;  %1535 = vperm.xlu1 %3006, %v1429_v60  }
 0x2c3   : > { %v1314_v3 = vmul.f32 0.020408163, %v1290_v6  ;;  %v1345_v20 = vsub.f32 %v1313_v51, %v1329_v47  ;;  %v1383_v51 = vld [vmem:[%s3214_s14 + $0x60] sm:$0xff] }
 0x2c4   : > { %1652 = vperm.xlu0 %3005, %v1478_v11   ;;  %v1304_v50 = vpop.xlane.xlu0 %1303 }
 0x2c5   : > { %v3024_v57 = vpop.eup %3023  ;;  %v1346_v54 = vsub.f32 %v1314_v3, %v1330_v37  ;;  %v1461_v3 = vmul.f32 %v1429_v60, %v3621_v4  ;;  %v1321_v40 = vmul.f32 0.020408163, %v1304_v50 }
 0x2c6   : > { %v1306_v21 = vpop.xlane.xlu1 %1305  ;;  %v1424_v22 = vmul.f32 %v3024_v57, %v1376_v15  ;;  %1500 = vperm.xlu1 %3006, %v3655_v42   ;;  %v1445_v57 = vld [vmem:[%s3219_s30 + $0x50] sm:$0xff]  ;;  %v1337_v42 = vmul.f32 %v3685_v8, %v3685_v8 }
 0x2c7   : > { %v1362_v59 = vmax.f32 %v1346_v54, 0.0  ;;  %v1322_v53 = vmul.f32 0.020408163, %v1306_v21  ;;  %v1440_v54 = vld [vmem:[%s3219_s30 + $0x28] sm:$0xff]  ;;  %v1477_v21 = vsub.f32 %v1445_v57, %v1461_v3  ;;  %v1386_v3 = vld [vmem:[%s3214_s14 + $0x78] sm:$0xff] }
 0x2c8   : > { %v1456_v15 = vmul.f32 %v1424_v22, %v3634_v44  ;;  %v1353_v52 = vsub.f32 %v1321_v40, %v1337_v42  ;;  %v1442_v40 = vld [vmem:[%s3219_s30 + $0x38] sm:$0xff] }
 0x2c9   : > { %v3026_v38 = vpop.eup %3025  ;;  %v1394_v37 = vadd.f32 1e-05, %v1362_v59  ;;  %v1354_v6 = vsub.f32 %v1322_v53, %v1338_v61  ;;  %v1448_v59 = vld [vmem:[%s3219_s30 + $0x68] sm:$0xff]  ;;  %v1361_v53 = vmax.f32 %v1345_v20, 0.0  ;;  %v1439_v20 = vld [vmem:[%s3219_s30 + $0x20] sm:$0xff] }
 0x2ca   : > { %v1432_v11 = vmul.f32 %v3026_v38, %v1384_v2  ;;  %1607 = vperm.xlu1 %3006, %v1469_v45   ;;  %v1472_v4 = vsub.f32 %v1440_v54, %v1456_v15  ;;  %v3028_v60 = vpop.eup %3027  ;;  %v1369_v50 = vmax.f32 %v1353_v52, 0.0 }
 0x2cb   : > { %3031 = vrsqrt.f32 %v1394_v37  ;;  %v1370_v5 = vmax.f32 %v1354_v6, 0.0  ;;  %v3030_v2 = vpop.eup %3029  ;;  %v1423_v38 = vmul.f32 %v3028_v60, %v1375_v29  ;;  %v1378_v37 = vld [vmem:[%s3214_s14 + $0x38] sm:$0xff]  ;;  %v1447_v60 = vld [vmem:[%s3219_s30 + $0x60] sm:$0xff] }
 0x2cc   : > { %1550 = vperm.xlu0 %3005, %v1432_v11   ;;  %v1464_v44 = vmul.f32 %v1432_v11, %v3642_v55  ;;  %v1393_v55 = vadd.f32 1e-05, %v1361_v53  ;;  %v1431_v45 = vmul.f32 %v3030_v2, %v1383_v51  ;;  %v1450_v29 = vld [vmem:[%s3219_s30 + $0x78] sm:$0xff]  ;;  %v1377_v53 = vld [vmem:[%s3214_s14 + $0x30] sm:$0xff] }
 0x2cd   : > { %v1402_v61 = vadd.f32 1e-05, %v1370_v5  ;;  %v1401_v5 = vadd.f32 1e-05, %v1369_v50  ;;  %v1455_v54 = vmul.f32 %v1423_v38, %v3637_v46  ;;  %v1385_v2 = vld [vmem:[%s3214_s14 + $0x70] sm:$0xff] }
 0x2ce   : > { %1647 = vperm.xlu1 %3006, %v1477_v21   ;;  %v1480_v47 = vsub.f32 %v1448_v59, %v1464_v44 }
 0x2cf   : > { %3033 = vrsqrt.f32 %v1402_v61  ;;  %v1471_v61 = vsub.f32 %v1439_v20, %v1455_v54  ;;  %v1579_v54 = vld [vmem:[%s3209_s23] sm:$0xff] }
 0x2d0   : > { %1622 = vperm.xlu0 %3005, %v1472_v4   ;;  %3035 = vrsqrt.f32 %v1393_v55  ;;  %v1463_v4 = vmul.f32 %v1431_v45, %v3650_v10 }
 0x2d1   : > { %3037 = vrsqrt.f32 %v1401_v5 }
 0x2d2   : > { %1505 = vperm.xlu1 %3006, %v1423_v38   ;;  %v1479_v46 = vsub.f32 %v1447_v60, %v1463_v4  ;;  %v1441_v38 = vld [vmem:[%s3219_s30 + $0x30] sm:$0xff] }
 0x2d4   : > { %1662 = vperm.xlu0 %3005, %v1480_v47  }
 0x2d5   : > { %v3032_v6 = vpop.eup %3031 }
 0x2d6   : > { %v1426_v11 = vmul.f32 %v3032_v6, %v1378_v37  ;;  %1545 = vperm.xlu1 %3006, %v1431_v45   ;;  %v1449_v37 = vld [vmem:[%s3219_s30 + $0x70] sm:$0xff]  ;;  %s1750_s30 = sshra.s32 %s2651_s29, 4 }
 0x2d7   : > { %s2652_s14 = sshll.u32 %s1750_s30, 3 }
 0x2d8   : > { %v1458_v42 = vmul.f32 %v1426_v11, %v3665_v14  ;;  %s3726_s27 = scalar_lea.vmem [#allocation3], %s2652_s14 }
 0x2d9   : > { %v3034_v15 = vpop.eup %3033 }
 0x2da   : > { %v1434_v57 = vmul.f32 %v3034_v15, %v1386_v3  ;;  %1510 = vperm.xlu1 %3006, %v1424_v22   ;;  %v1474_v21 = vsub.f32 %v1442_v40, %v1458_v42  ;;  %v3036_v59 = vpop.eup %3035  ;;  %v1580_v3 = vld [vmem:[%s3209_s23 + $0x8] sm:$0xff] }
 0x2db   : > { %v1425_v22 = vmul.f32 %v3036_v59, %v1377_v53  ;;  %v3038_v52 = vpop.eup %3037 }
 0x2dc   : > { %1560 = vperm.xlu0 %3005, %v1434_v57   ;;  %v1466_v44 = vmul.f32 %v1434_v57, %v3672_v0  ;;  %v1433_v10 = vmul.f32 %v3038_v52, %v1385_v2  ;;  %v1588_v57 = vld [vmem:[%s3209_s23 + $0x48] sm:$0xff] }
 0x2dd   : > { %v1457_v0 = vmul.f32 %v1425_v22, %v3675_v39 }
 0x2de   : > { %1617 = vperm.xlu1 %3006, %v1471_v61   ;;  %v1482_v14 = vsub.f32 %v1450_v29, %v1466_v44  ;;  %v1465_v51 = vmul.f32 %v1433_v10, %v3685_v8  ;;  %v1587_v44 = vld [vmem:[%s3209_s23 + $0x40] sm:$0xff] }
 0x2df   : > { %v1473_v47 = vsub.f32 %v1441_v38, %v1457_v0 }
 0x2e0   : > { %1632 = vperm.xlu0 %3005, %v1474_v21   ;;  %v1481_v6 = vsub.f32 %v1449_v37, %v1465_v51 }
 0x2e2   : > { %1657 = vperm.xlu1 %3006, %v1479_v46  }
 0x2e4   : > { %1672 = vperm.xlu0 %3005, %v1482_v14  }
 0x2e6   : > { %1515 = vperm.xlu1 %3006, %v1425_v22  }
 0x2ea   : > { %1555 = vperm.xlu1 %3006, %v1433_v10  }
 0x2ee   : > { %1520 = vperm.xlu1 %3006, %v1426_v11  }
 0x2f2   : > { %1627 = vperm.xlu1 %3006, %v1473_v47  }
 0x2f6   : > { %1667 = vperm.xlu1 %3006, %v1481_v6  }
 0x329   : > { %v1486_v55 = vpop.permute.xlu0 %1485 }
 0x32a   : > { %v1563_v61 = vmul.f32 %v3517_v12, %v1486_v55  ;;  %v1582_v55 = vld [vmem:[%s3209_s23 + $0x18] sm:$0xff] }
 0x32d   : > { %v1531_v50 = vpop.permute.xlu0 %1530  ;;  %v1526_v45 = vpop.permute.xlu1 %1525 }
 0x32e   : > { %v1572_v21 = vmul.f32 %v3523_v19, %v1531_v50  ;;  %v1590_v50 = vld [vmem:[%s3209_s23 + $0x58] sm:$0xff] }
 0x331   : > { %v1603_v15 = vpop.permute.xlu0 %1602  ;;  %v1491_v39 = vpop.permute.xlu1 %1490 }
 0x332   : > { %v1676_v5 = vadd.f32 %v1603_v15, %v1580_v3  ;;  %v1564_v11 = vmul.f32 %v3521_v18, %v1491_v39  ;;  %v1571_v18 = vmul.f32 %v3519_v13, %v1526_v45  ;;  %v1581_v39 = vld [vmem:[%s3209_s23 + $0x10] sm:$0xff] }
 0x334   : > { %v1692_v20 = vadd.f32 %v1676_v5, %v1564_v11 }
 0x335   : > { %v1643_v42 = vpop.permute.xlu0 %1642  ;;  %v1598_v40 = vpop.permute.xlu1 %1597 }
 0x336   : > { %v1684_v8 = vadd.f32 %v1643_v42, %v1588_v57  ;;  %v1675_v4 = vadd.f32 %v1598_v40, %v1579_v54  ;;  %v1708_v60 = vmax.f32 %v1692_v20, 0.0  ;;  %v1589_v40 = vld [vmem:[%s3209_s23 + $0x50] sm:$0xff] }
 0x338   : > { %v1691_v29 = vadd.f32 %v1675_v4, %v1563_v61  ;;  %v1700_v46 = vadd.f32 %v1684_v8, %v1572_v21  ;;  %v1726_v52 = vsel %vm512_vm0, %v1708_v60, 0.0 }
 0x339   : > { %v1638_v14 = vpop.permute.xlu1 %1637 }
 0x33a   : > { %v1707_v53 = vmax.f32 %v1691_v29, 0.0  ;;  %v1683_v22 = vadd.f32 %v1638_v14, %v1587_v44  ;;  %v1716_v19 = vmax.f32 %v1700_v46, 0.0 }
 0x33b   : > { %v1541_v59 = vpop.permute.xlu0 %1540 }
 0x33c   : > { %v1725_v12 = vsel %vm512_vm0, %v1707_v53, 0.0  ;;  %v1699_v2 = vadd.f32 %v1683_v22, %v1571_v18  ;;  %v1734_v47 = vsel %vm512_vm0, %v1716_v19, 0.0  ;;  %v1574_v42 = vmul.f32 %v3539_v49, %v1541_v59 }
 0x33d   : > { %v1742_v10 = vpack.c.bf16 %v1726_v52, %v1725_v12  ;;  %v1496_v0 = vpop.permute.xlu1 %1495 }
 0x33e   : > { %v1715_v38 = vmax.f32 %v1699_v2, 0.0  ;;  %v1565_v20 = vmul.f32 %v3530_v41, %v1496_v0  ;;  %v1592_v0 = vld [vmem:[%s3209_s23 + $0x68] sm:$0xff] }
 0x33f   : > { %1754 = vst [vmem:[%s3726_s27] sm:$0xff] %v1742_v10  ;;  %v1613_v13 = vpop.permute.xlu0 %1612  ;;  %v1584_v10 = vld [vmem:[%s3209_s23 + $0x28] sm:$0xff] }
 0x340   : > { %v1733_v51 = vsel %vm512_vm0, %v1715_v38, 0.0  ;;  %v1678_v15 = vadd.f32 %v1613_v13, %v1582_v55 }
 0x341   : > { %v1746_v37 = vpack.c.bf16 %v1734_v47, %v1733_v51  ;;  %v1536_v6 = vpop.permute.xlu1 %1535 }
 0x342   : > { %v1573_v29 = vmul.f32 %v3532_v43, %v1536_v6 }
 0x343   : > { %1758 = vst [vmem:[%s3726_s27 + $0x20] sm:$0xff] %v1746_v37  ;;  %v1653_v45 = vpop.permute.xlu0 %1652  ;;  %v1583_v37 = vld [vmem:[%s3209_s23 + $0x20] sm:$0xff] }
 0x344   : > { %v1686_v57 = vadd.f32 %v1653_v45, %v1590_v50 }
 0x345   : > { %v1501_v3 = vpop.permute.xlu1 %1500 }
 0x346   : > { %v1566_v5 = vmul.f32 %v3537_v48, %v1501_v3  ;;  %v1702_v61 = vadd.f32 %v1686_v57, %v1574_v42 }
 0x348   : > { %v1694_v11 = vadd.f32 %v1678_v15, %v1566_v5  ;;  %v1718_v14 = vmax.f32 %v1702_v61, 0.0  ;;  %v1591_v5 = vld [vmem:[%s3209_s23 + $0x60] sm:$0xff] }
 0x349   : > { %v1608_v54 = vpop.permute.xlu1 %1607 }
 0x34a   : > { %v1677_v8 = vadd.f32 %v1608_v54, %v1581_v39  ;;  %v1710_v21 = vmax.f32 %v1694_v11, 0.0  ;;  %v1736_v43 = vsel %vm512_vm0, %v1718_v14, 0.0  ;;  %v1586_v14 = vld [vmem:[%s3209_s23 + $0x38] sm:$0xff] }
 0x34b   : > { %v1551_v44 = vpop.permute.xlu0 %1550 }
 0x34c   : > { %v1693_v4 = vadd.f32 %v1677_v8, %v1565_v20  ;;  %v1728_v49 = vsel %vm512_vm0, %v1710_v21, 0.0  ;;  %v1576_v45 = vmul.f32 %v3552_v63, %v1551_v44 }
 0x34d   : > { %v1648_v60 = vpop.permute.xlu1 %1647 }
 0x34e   : > { %v1709_v48 = vmax.f32 %v1693_v4, 0.0  ;;  %v1685_v46 = vadd.f32 %v1648_v60, %v1589_v40 }
 0x34f   : > { %v1623_v52 = vpop.permute.xlu0 %1622 }
 0x350   : > { %v1727_v41 = vsel %vm512_vm0, %v1709_v48, 0.0  ;;  %v1701_v59 = vadd.f32 %v1685_v46, %v1573_v29  ;;  %v1680_v47 = vadd.f32 %v1623_v52, %v1584_v10 }
 0x351   : > { %v1743_v18 = vpack.c.bf16 %v1728_v49, %v1727_v41  ;;  %v1506_v53 = vpop.permute.xlu1 %1505  ;;  %v1594_v49 = vld [vmem:[%s3209_s23 + $0x78] sm:$0xff] }
 0x352   : > { %v1717_v22 = vmax.f32 %v1701_v59, 0.0  ;;  %v1567_v3 = vmul.f32 %v3546_v56, %v1506_v53 }
 0x353   : > { %1755 = vst [vmem:[%s3726_s27 + $0x8] sm:$0xff] %v1743_v18  ;;  %v1663_v38 = vpop.permute.xlu0 %1662 }
 0x354   : > { %v1735_v12 = vsel %vm512_vm0, %v1717_v22, 0.0  ;;  %v1688_v6 = vadd.f32 %v1663_v38, %v1592_v0  ;;  %v1585_v22 = vld [vmem:[%s3209_s23 + $0x30] sm:$0xff] }
 0x355   : > { %v1747_v19 = vpack.c.bf16 %v1736_v43, %v1735_v12  ;;  %v1546_v2 = vpop.permute.xlu1 %1545  ;;  %v1593_v0 = vld [vmem:[%s3209_s23 + $0x70] sm:$0xff] }
 0x356   : > { %v1704_v39 = vadd.f32 %v1688_v6, %v1576_v45  ;;  %v1575_v20 = vmul.f32 %v3548_v58, %v1546_v2 }
 0x357   : > { %1759 = vst [vmem:[%s3726_s27 + $0x28] sm:$0xff] %v1747_v19 }
 0x358   : > { %v1720_v40 = vmax.f32 %v1704_v39, 0.0 }
 0x359   : > { %v1511_v13 = vpop.permute.xlu1 %1510 }
 0x35a   : > { %v1568_v51 = vmul.f32 %v3550_v62, %v1511_v13  ;;  %v1738_v58 = vsel %vm512_vm0, %v1720_v40, 0.0 }
 0x35b   : > { %v1561_v54 = vpop.permute.xlu0 %1560 }
 0x35c   : > { %v1696_v55 = vadd.f32 %v1680_v47, %v1568_v51  ;;  %v1578_v19 = vmul.f32 %v3569_v17, %v1561_v54 }
 0x35d   : > { %v1618_v50 = vpop.permute.xlu1 %1617 }
 0x35e   : > { %v1679_v15 = vadd.f32 %v1618_v50, %v1583_v37  ;;  %v1712_v57 = vmax.f32 %v1696_v55, 0.0 }
 0x35f   : > { %v1633_v60 = vpop.permute.xlu0 %1632 }
 0x360   : > { %v1695_v11 = vadd.f32 %v1679_v15, %v1567_v3  ;;  %v1730_v63 = vsel %vm512_vm0, %v1712_v57, 0.0  ;;  %v1682_v18 = vadd.f32 %v1633_v60, %v1586_v14 }
 0x361   : > { %v1658_v42 = vpop.permute.xlu1 %1657 }
 0x362   : > { %v1711_v62 = vmax.f32 %v1695_v11, 0.0  ;;  %v1687_v8 = vadd.f32 %v1658_v42, %v1591_v5 }
 0x363   : > { %v1673_v41 = vpop.permute.xlu0 %1672 }
 0x364   : > { %v1729_v56 = vsel %vm512_vm0, %v1711_v62, 0.0  ;;  %v1703_v61 = vadd.f32 %v1687_v8, %v1575_v20  ;;  %v1690_v52 = vadd.f32 %v1673_v41, %v1594_v49 }
 0x365   : > { %v1744_v21 = vpack.c.bf16 %v1730_v63, %v1729_v56  ;;  %v1516_v4 = vpop.permute.xlu1 %1515 }
 0x366   : > { %v1719_v44 = vmax.f32 %v1703_v61, 0.0  ;;  %v1569_v2 = vmul.f32 %v3561_v7, %v1516_v4  ;;  %v1706_v38 = vadd.f32 %v1690_v52, %v1578_v19 }
 0x367   : > { %1756 = vst [vmem:[%s3726_s27 + $0x10] sm:$0xff] %v1744_v21 }
 0x368   : > { %v1737_v29 = vsel %vm512_vm0, %v1719_v44, 0.0  ;;  %v1722_v55 = vmax.f32 %v1706_v38, 0.0 }
 0x369   : > { %v1748_v48 = vpack.c.bf16 %v1738_v58, %v1737_v29  ;;  %v1556_v46 = vpop.permute.xlu1 %1555 }
 0x36a   : > { %v1577_v37 = vmul.f32 %v3563_v9, %v1556_v46  ;;  %v1740_v15 = vsel %vm512_vm0, %v1722_v55, 0.0 }
 0x36b   : > { %1760 = vst [vmem:[%s3726_s27 + $0x30] sm:$0xff] %v1748_v48 }
 0x36d   : > { %v1521_v59 = vpop.permute.xlu1 %1520 }
 0x36e   : > { %v1570_v53 = vmul.f32 %v3567_v16, %v1521_v59 }
 0x370   : > { %v1698_v43 = vadd.f32 %v1682_v18, %v1570_v53 }
 0x371   : > { %v1628_v12 = vpop.permute.xlu1 %1627 }
 0x372   : > { %v1681_v10 = vadd.f32 %v1628_v12, %v1585_v22  ;;  %v1714_v13 = vmax.f32 %v1698_v43, 0.0 }
 0x374   : > { %v1697_v47 = vadd.f32 %v1681_v10, %v1569_v2  ;;  %v1732_v50 = vsel %vm512_vm0, %v1714_v13, 0.0 }
 0x375   : > { %v1668_v51 = vpop.permute.xlu1 %1667 }
 0x376   : > { %v1713_v6 = vmax.f32 %v1697_v47, 0.0  ;;  %v1689_v16 = vadd.f32 %v1668_v51, %v1593_v0 }
 0x378   : > { %v1731_v17 = vsel %vm512_vm0, %v1713_v6, 0.0  ;;  %v1705_v7 = vadd.f32 %v1689_v16, %v1577_v37 }
 0x379   : > { %v1745_v45 = vpack.c.bf16 %v1732_v50, %v1731_v17 }
 0x37a   : > { %v1721_v3 = vmax.f32 %v1705_v7, 0.0 }
 0x37b   : > { %1757 = vst [vmem:[%s3726_s27 + $0x18] sm:$0xff] %v1745_v45 }
 0x37c   : > { %v1739_v5 = vsel %vm512_vm0, %v1721_v3, 0.0 }
 0x37d   : > { %v1749_v9 = vpack.c.bf16 %v1740_v15, %v1739_v5 }
 0x37f   : > { %1761 = vst [vmem:[%s3726_s27 + $0x38] sm:$0xff] %v1749_v9 }
 0x380 PF: > { %p2653_p13 = scmp.ne.s32.totalorder %s3099_s28, 1 }
 0x381   : > { %v2655_v54 = vcombine.high (!%p2653_p13), %v3437_v23, %v3440_v24  ;;  %v2663_v42 = vcombine.high (!%p2653_p13), %v3461_v31, %v3464_v32  ;;  %v2654_v29 = vcombine.low (!%p2653_p13), %v3437_v23, %v3440_v24  ;;  %v2662_v48 = vcombine.low (!%p2653_p13), %v3461_v31, %v3464_v32 }
 0x382   : > { %1765 = sbr.rel (%p2653_p13) target bundleno = 1532 (0x5fc), region = 64  ;;  %v2657_v46 = vcombine.high (!%p2653_p13), %v3443_v25, %v3446_v26  ;;  %v2665_v14 = vcombine.high (!%p2653_p13), %v3467_v33, %v3470_v34  ;;  %v2656_v49 = vcombine.low (!%p2653_p13), %v3443_v25, %v3446_v26  ;;  %v2664_v23 = vcombine.low (!%p2653_p13), %v3467_v33, %v3470_v34  ;;  %v4088_v25 = vld [vmem:[#allocation8_spill] sm:$0xff] (!%p2653_p13) }
 0x383   : > { %1894 = vmatprep.mubr.bf16.mxu0 (!%p2653_p13), %v2655_v54  ;;  %1926 = vmatprep.mubr.bf16.mxu1 (!%p2653_p13), %v2663_v42  ;;  %v2659_v24 = vcombine.high (!%p2653_p13), %v3449_v27, %v3452_v28  ;;  %v2667_v31 = vcombine.high (!%p2653_p13), %v3473_v35, %v3476_v36  ;;  %v2658_v32 = vcombine.low (!%p2653_p13), %v3449_v27, %v3452_v28  ;;  %v4090_v34 = vld [vmem:[#allocation9_spill] sm:$0xff] (!%p2653_p13) }
 0x384   : > { %v2666_v41 = vcombine.low (!%p2653_p13), %v3473_v35, %v3476_v36  ;;  %v2661_v26 = vcombine.high (!%p2653_p13), %v4088_v25, %v3458_v30  ;;  %v4089_v33 = vld [vmem:[#allocation10_spill] sm:$0xff] (!%p2653_p13)  ;;  %v2660_v18 = vcombine.low (!%p2653_p13), %v4088_v25, %v3458_v30 }
 0x385   : > { %v2669_v59 = vcombine.high (!%p2653_p13), %v4090_v34, %v4089_v33  ;;  %v2668_v53 = vcombine.low (!%p2653_p13), %v4090_v34, %v4089_v33  ;;  %v3115_v34 = vmov (!%p2653_p13), 0  }
 0x386   : > { %v1774_v39 = vld [vmem:[#allocation3 + $0x40] sm:$0xff] (!%p2653_p13)  ;;  %v1775_v11 = vld [vmem:[#allocation3 + $0x48] sm:$0xff] (!%p2653_p13)  ;;  %v1776_v20 = vld [vmem:[#allocation3 + $0x50] sm:$0xff] (!%p2653_p13)  ;;  %3039 = vset.pattern.permute.xlu0 (!%p2653_p13), %v3115_v34  ;;  %3040 = vset.pattern.permute.xlu1 (!%p2653_p13), %v3115_v34 }
 0x387   : > { %v1766_v57 = vld [vmem:[#allocation3] sm:$0xff] (!%p2653_p13)  ;;  %2736 = vmatprep.subr.bf16.mxu0 (!%p2653_p13), %v1774_v39  ;;  %2816 = vmatprep.subr.bf16.mxu1 (!%p2653_p13), %v1774_v39  ;;  %v1767_v1 = vld [vmem:[#allocation3 + $0x8] sm:$0xff] (!%p2653_p13)  ;;  %v1768_v62 = vld [vmem:[#allocation3 + $0x10] sm:$0xff] (!%p2653_p13) }
 0x388   : > { %2737 = vmatpush3.bf16.msra.mxu0 (!%p2653_p13), %v1766_v57  ;;  %2824 = vmatpush3.bf16.msra.mxu1 (!%p2653_p13), %v1766_v57  ;;  %v1777_v8 = vld [vmem:[#allocation3 + $0x58] sm:$0xff] (!%p2653_p13)  ;;  %v1778_v63 = vld [vmem:[#allocation3 + $0x60] sm:$0xff] (!%p2653_p13)  ;;  %v1779_v61 = vld [vmem:[#allocation3 + $0x68] sm:$0xff] (!%p2653_p13) }
 0x389   : > { %2738 = vmatprep.subr.bf16.mxu0 %v1775_v11  ;;  %2817 = vmatprep.subr.bf16.mxu1 %v1775_v11  ;;  %v1769_v40 = vld [vmem:[#allocation3 + $0x18] sm:$0xff]  ;;  %v1770_v56 = vld [vmem:[#allocation3 + $0x20] sm:$0xff]  ;;  %v1771_v21 = vld [vmem:[#allocation3 + $0x28] sm:$0xff] }
 0x38a   : > { %v1780_v4 = vld [vmem:[#allocation3 + $0x70] sm:$0xff]  ;;  %v1781_v60 = vld [vmem:[#allocation3 + $0x78] sm:$0xff] }
 0x38b   : > { %v1772_v44 = vld [vmem:[#allocation3 + $0x30] sm:$0xff]  ;;  %v1773_v58 = vld [vmem:[#allocation3 + $0x38] sm:$0xff] }
 0x38c   : > { %2739 = vmatpush3.bf16.msra.mxu0 %v1767_v1  ;;  %2825 = vmatpush3.bf16.msra.mxu1 %v1767_v1 }
 0x38d   : > { %2740 = vmatprep.subr.bf16.mxu0 %v1776_v20  ;;  %2818 = vmatprep.subr.bf16.mxu1 %v1776_v20 }
 0x390   : > { %2741 = vmatpush3.bf16.msra.mxu0 %v1768_v62  ;;  %2826 = vmatpush3.bf16.msra.mxu1 %v1768_v62 }
 0x391   : > { %2742 = vmatprep.subr.bf16.mxu0 %v1777_v8  ;;  %2819 = vmatprep.subr.bf16.mxu1 %v1777_v8 }
 0x394   : > { %2743 = vmatpush3.bf16.msra.mxu0 %v1769_v40  ;;  %2827 = vmatpush3.bf16.msra.mxu1 %v1769_v40 }
 0x395   : > { %2744 = vmatprep.subr.bf16.mxu0 %v1778_v63  ;;  %2820 = vmatprep.subr.bf16.mxu1 %v1778_v63 }
 0x398   : > { %2745 = vmatpush3.bf16.msra.mxu0 %v1770_v56  ;;  %2828 = vmatpush3.bf16.msra.mxu1 %v1770_v56 }
 0x399   : > { %2746 = vmatprep.subr.bf16.mxu0 %v1779_v61  ;;  %2821 = vmatprep.subr.bf16.mxu1 %v1779_v61 }
 0x39c   : > { %2747 = vmatpush3.bf16.msra.mxu0 %v1771_v21  ;;  %2829 = vmatpush3.bf16.msra.mxu1 %v1771_v21 }
 0x39d   : > { %2748 = vmatprep.subr.bf16.mxu0 %v1780_v4  ;;  %2822 = vmatprep.subr.bf16.mxu1 %v1780_v4 }
 0x3a0   : > { %2749 = vmatpush3.bf16.msra.mxu0 %v1772_v44  ;;  %2830 = vmatpush3.bf16.msra.mxu1 %v1772_v44 }
 0x3a1   : > { %2750 = vmatprep.subr.bf16.mxu0 %v1781_v60  ;;  %2823 = vmatprep.subr.bf16.mxu1 %v1781_v60 }
 0x3a4   : > { %2751 = vmatpush3.bf16.msra.mxu0 %v1773_v58  ;;  %2831 = vmatpush3.bf16.msra.mxu1 %v1773_v58 }
 0x3a7   : > { %1895 = vmatmul.mubr.bf16.vlgmr.msra.gmra.mrb[0].mxu0 %v2654_v29  ;;  %1927 = vmatmul.mubr.bf16.vlgmr.msra.gmra.mrb[0].mxu1 %v2662_v48 }
 0x3a8   : > { %1902 = vmatprep.mubr.bf16.mxu0 %v2657_v46  ;;  %1934 = vmatprep.mubr.bf16.mxu1 %v2665_v14 }
 0x3af   : > { %1903 = vmatmul.mubr.bf16.gmra.mrb[4].mxu0 %v2656_v49  ;;  %1935 = vmatmul.mubr.bf16.gmra.mrb[4].mxu1 %v2664_v23 }
 0x3b0   : > { %1910 = vmatprep.mubr.bf16.mxu0 %v2659_v24  ;;  %1942 = vmatprep.mubr.bf16.mxu1 %v2667_v31 }
 0x3b7   : > { %1911 = vmatmul.mubr.bf16.gmra.mrb[8].mxu0 %v2658_v32  ;;  %1943 = vmatmul.mubr.bf16.gmra.mrb[8].mxu1 %v2666_v41 }
 0x3b8   : > { %1918 = vmatprep.mubr.bf16.mxu0 %v2661_v26  ;;  %1950 = vmatprep.mubr.bf16.mxu1 %v2669_v59 }
 0x3bf   : > { %1919 = vmatmul.mubr.bf16.gmra.mrb[12].mxu0 %v2660_v18  ;;  %1951 = vmatmul.mubr.bf16.gmra.mrb[12].mxu1 %v2668_v53 }
 0x47a   : > { %v2752_v27 = vpop.f32.mrb[0].mxu0  ;;  %v2776_v28 = vpop.f32.mrb[0].mxu1 }
 0x47b   : > { %v2753_v35 = vpop.f32.mrb[1].mxu0  ;;  %v2777_v36 = vpop.f32.mrb[1].mxu1 }
 0x47c   : > { %v3821_v22 = vadd.f32 %v2753_v35, %v2752_v27  ;;  %v3823_v52 = vadd.f32 %v2777_v36, %v2776_v28  ;;  %v2755_v43 = vpop.f32.mrb[2].mxu0  ;;  %v2779_v12 = vpop.f32.mrb[2].mxu1 }
 0x47d   : > { %v2756_v19 = vpop.f32.mrb[3].mxu0  ;;  %v2780_v2 = vpop.f32.mrb[3].mxu1 }
 0x47e   : > { %v3825_v10 = vadd.f32 %v2756_v19, %v2755_v43  ;;  %v3827_v30 = vadd.f32 %v2780_v2, %v2779_v12  ;;  %1959 = vadd.xlane.f32.xlu0 %v3821_v22  ;;  %v2007_v15 = vmul.f32 %v3821_v22, %v3821_v22  ;;  %v2015_v11 = vmul.f32 %v3823_v52, %v3823_v52 }
 0x480   : > { %1977 = vadd.xlane.f32.xlu1 %v3827_v30  ;;  %v2008_v0 = vmul.f32 %v3825_v10, %v3825_v10  ;;  %v2016_v7 = vmul.f32 %v3827_v30, %v3827_v30 }
 0x482   : > { %1975 = vadd.xlane.f32.xlu0 %v3823_v52  ;;  %v2758_v38 = vpop.f32.mrb[4].mxu0  ;;  %v2782_v13 = vpop.f32.mrb[4].mxu1 }
 0x483   : > { %v2759_v47 = vpop.f32.mrb[5].mxu0  ;;  %v2783_v51 = vpop.f32.mrb[5].mxu1 }
 0x484   : > { %2025 = vadd.xlane.f32.xlu1 %v2008_v0  ;;  %v3834_v37 = vadd.f32 %v2759_v47, %v2758_v38  ;;  %v2761_v6 = vpop.f32.mrb[6].mxu0  ;;  %v3836_v16 = vadd.f32 %v2783_v51, %v2782_v13  ;;  %v2785_v55 = vpop.f32.mrb[6].mxu1 }
 0x485   : > { %v2762_v50 = vpop.f32.mrb[7].mxu0  ;;  %v2786_v17 = vpop.f32.mrb[7].mxu1 }
 0x486   : > { %1961 = vadd.xlane.f32.xlu0 %v3825_v10  ;;  %v3841_v45 = vadd.f32 %v2762_v50, %v2761_v6  ;;  %v3843_v3 = vadd.f32 %v2786_v17, %v2785_v55  ;;  %v2009_v56 = vmul.f32 %v3834_v37, %v3834_v37  ;;  %v2017_v23 = vmul.f32 %v3836_v16, %v3836_v16 }
 0x488   : > { %2041 = vadd.xlane.f32.xlu1 %v2016_v7  ;;  %v2010_v60 = vmul.f32 %v3841_v45, %v3841_v45  ;;  %v2018_v32 = vmul.f32 %v3843_v3, %v3843_v3 }
 0x48a   : > { %2023 = vadd.xlane.f32.xlu0 %v2007_v15  ;;  %v2764_v5 = vpop.f32.mrb[8].mxu0  ;;  %v2788_v9 = vpop.f32.mrb[8].mxu1 }
 0x48b   : > { %v2765_v39 = vpop.f32.mrb[9].mxu0  ;;  %v2789_v57 = vpop.f32.mrb[9].mxu1 }
 0x48c   : > { %1963 = vadd.xlane.f32.xlu1 %v3834_v37  ;;  %v3850_v54 = vadd.f32 %v2765_v39, %v2764_v5  ;;  %v2767_v42 = vpop.f32.mrb[10].mxu0  ;;  %v3852_v1 = vadd.f32 %v2789_v57, %v2788_v9  ;;  %v2791_v20 = vpop.f32.mrb[10].mxu1 }
 0x48d   : > { %v2768_v62 = vpop.f32.mrb[11].mxu0  ;;  %v2792_v8 = vpop.f32.mrb[11].mxu1 }
 0x48e   : > { %2039 = vadd.xlane.f32.xlu0 %v2015_v11  ;;  %v3854_v40 = vadd.f32 %v2768_v62, %v2767_v42  ;;  %v3856_v63 = vadd.f32 %v2792_v8, %v2791_v20  ;;  %v2011_v41 = vmul.f32 %v3850_v54, %v3850_v54  ;;  %v2019_v26 = vmul.f32 %v3852_v1, %v3852_v1 }
 0x490   : > { %1965 = vadd.xlane.f32.xlu1 %v3841_v45  ;;  %v2012_v25 = vmul.f32 %v3854_v40, %v3854_v40  ;;  %v2020_v33 = vmul.f32 %v3856_v63, %v3856_v63 }
 0x492   : > { %1979 = vadd.xlane.f32.xlu0 %v3836_v16  ;;  %v2770_v61 = vpop.f32.mrb[12].mxu0  ;;  %v2794_v21 = vpop.f32.mrb[12].mxu1 }
 0x493   : > { %v2771_v4 = vpop.f32.mrb[13].mxu0  ;;  %v2795_v44 = vpop.f32.mrb[13].mxu1 }
 0x494   : > { %1981 = vadd.xlane.f32.xlu1 %v3843_v3  ;;  %v3865_v58 = vadd.f32 %v2771_v4, %v2770_v61  ;;  %v2773_v29 = vpop.f32.mrb[14].mxu0  ;;  %v3867_v48 = vadd.f32 %v2795_v44, %v2794_v21  ;;  %v2797_v46 = vpop.f32.mrb[14].mxu1 }
 0x495   : > { %v2774_v14 = vpop.f32.mrb[15].mxu0  ;;  %v2798_v49 = vpop.f32.mrb[15].mxu1 }
 0x496   : > { %2027 = vadd.xlane.f32.xlu0 %v2009_v56  ;;  %v3871_v24 = vadd.f32 %v2774_v14, %v2773_v29  ;;  %v3873_v31 = vadd.f32 %v2798_v49, %v2797_v46  ;;  %v2013_v59 = vmul.f32 %v3865_v58, %v3865_v58  ;;  %v2021_v53 = vmul.f32 %v3867_v48, %v3867_v48 }
 0x498   : > { %2029 = vadd.xlane.f32.xlu1 %v2010_v60  ;;  %v2014_v18 = vmul.f32 %v3871_v24, %v3871_v24  ;;  %v2022_v27 = vmul.f32 %v3873_v31, %v3873_v31 }
 0x49a   : > { %2043 = vadd.xlane.f32.xlu0 %v2017_v23 }
 0x49c   : > { %2045 = vadd.xlane.f32.xlu1 %v2018_v32 }
 0x49e   : > { %1967 = vadd.xlane.f32.xlu0 %v3850_v54 }
 0x4a0   : > { %1969 = vadd.xlane.f32.xlu1 %v3854_v40 }
 0x4a2   : > { %1983 = vadd.xlane.f32.xlu0 %v3852_v1 }
 0x4a4   : > { %1985 = vadd.xlane.f32.xlu1 %v3856_v63 }
 0x4a6   : > { %2031 = vadd.xlane.f32.xlu0 %v2011_v41 }
 0x4a8   : > { %2033 = vadd.xlane.f32.xlu1 %v2012_v25 }
 0x4aa   : > { %2047 = vadd.xlane.f32.xlu0 %v2019_v26 }
 0x4ac   : > { %2049 = vadd.xlane.f32.xlu1 %v2020_v33 }
 0x4ae   : > { %1971 = vadd.xlane.f32.xlu0 %v3865_v58 }
 0x4b0   : > { %1973 = vadd.xlane.f32.xlu1 %v3871_v24 }
 0x4b2   : > { %1987 = vadd.xlane.f32.xlu0 %v3867_v48 }
 0x4b4   : > { %1989 = vadd.xlane.f32.xlu1 %v3873_v31 }
 0x4b6   : > { %2035 = vadd.xlane.f32.xlu0 %v2013_v59 }
 0x4b8   : > { %2037 = vadd.xlane.f32.xlu1 %v2014_v18 }
 0x4ba   : > { %2051 = vadd.xlane.f32.xlu0 %v2021_v53 }
 0x4bc   : > { %2053 = vadd.xlane.f32.xlu1 %v2022_v27 }
 0x50b   : > { %v1960_v28 = vpop.xlane.xlu0 %1959 }
 0x50c   : > { %v3903_v2 = vmul.f32 0.020408163, %v1960_v28 }
 0x50d   : > { %v1978_v35 = vpop.xlane.xlu1 %1977 }
 0x50e   : > { %v3901_v12 = vmul.f32 0.020408163, %v1978_v35  ;;  %v2071_v50 = vmul.f32 %v3903_v2, %v3903_v2  ;;  %v2120_v35 = vld [vmem:[%s3232_s22 + $0x8] sm:$0xff] }
 0x50f   : > { %v1976_v36 = vpop.xlane.xlu0 %1975 }
 0x510   : > { %v2080_v13 = vmul.f32 %v3901_v12, %v3901_v12  ;;  %v3913_v5 = vmul.f32 0.020408163, %v1976_v36 }
 0x511   : > { %v2026_v43 = vpop.xlane.xlu1 %2025 }
 0x512   : > { %v2056_v47 = vmul.f32 0.020408163, %v2026_v43  ;;  %v2079_v8 = vmul.f32 %v3913_v5, %v3913_v5 }
 0x513   : > { %v1962_v19 = vpop.xlane.xlu0 %1961 }
 0x514   : > { %v3905_v0 = vmul.f32 0.020408163, %v1962_v19 }
 0x515   : > { %v2042_v38 = vpop.xlane.xlu1 %2041 }
 0x516   : > { %v2072_v51 = vmul.f32 %v3905_v0, %v3905_v0  ;;  %v2064_v6 = vmul.f32 0.020408163, %v2042_v38 }
 0x517   : > { %v2024_v55 = vpop.xlane.xlu0 %2023 }
 0x518   : > { %v2088_v17 = vsub.f32 %v2056_v47, %v2072_v51  ;;  %v2096_v7 = vsub.f32 %v2064_v6, %v2080_v13  ;;  %v2055_v15 = vmul.f32 0.020408163, %v2024_v55  ;;  %v2119_v13 = vld [vmem:[%s3232_s22] sm:$0xff] }
 0x519   : > { %v1964_v9 = vpop.xlane.xlu1 %1963 }
 0x51a   : > { %v2104_v39 = vmax.f32 %v2088_v17, 0.0  ;;  %v2112_v57 = vmax.f32 %v2096_v7, 0.0  ;;  %v2087_v11 = vsub.f32 %v2055_v15, %v2071_v50  ;;  %v3917_v44 = vmul.f32 0.020408163, %v1964_v9 }
 0x51b   : > { %v2040_v42 = vpop.xlane.xlu0 %2039 }
 0x51c   : > { %v2136_v20 = vadd.f32 1e-05, %v2104_v39  ;;  %v2103_v62 = vmax.f32 %v2087_v11, 0.0  ;;  %v2063_v56 = vmul.f32 0.020408163, %v2040_v42  ;;  %v2073_v23 = vmul.f32 %v3917_v44, %v3917_v44  ;;  %v2128_v42 = vld [vmem:[%s3232_s22 + $0x48] sm:$0xff] }
 0x51d   : > { %v1966_v61 = vpop.xlane.xlu1 %1965  ;;  %v2144_v21 = vadd.f32 1e-05, %v2112_v57 }
 0x51e   : > { %3041 = vrsqrt.f32 %v2136_v20  ;;  %v2135_v4 = vadd.f32 1e-05, %v2103_v62  ;;  %v2095_v60 = vsub.f32 %v2063_v56, %v2079_v8  ;;  %v3919_v46 = vmul.f32 0.020408163, %v1966_v61  ;;  %v2127_v8 = vld [vmem:[%s3232_s22 + $0x40] sm:$0xff] }
 0x51f   : > { %v1980_v29 = vpop.xlane.xlu0 %1979 }
 0x520   : > { %3043 = vrsqrt.f32 %v2135_v4  ;;  %v2111_v14 = vmax.f32 %v2095_v60, 0.0  ;;  %v2074_v25 = vmul.f32 %v3919_v46, %v3919_v46  ;;  %v3925_v26 = vmul.f32 0.020408163, %v1980_v29 }
 0x521   : > { %v1982_v49 = vpop.xlane.xlu1 %1981  ;;  %3045 = vrsqrt.f32 %v2144_v21 }
 0x522   : > { %v2143_v32 = vadd.f32 1e-05, %v2111_v14  ;;  %v3927_v33 = vmul.f32 0.020408163, %v1982_v49  ;;  %v2081_v36 = vmul.f32 %v3925_v26, %v3925_v26 }
 0x523   : > { %v2028_v41 = vpop.xlane.xlu0 %2027 }
 0x524   : > { %v2057_v34 = vmul.f32 0.020408163, %v2028_v41  ;;  %3047 = vrsqrt.f32 %v2143_v32  ;;  %v2082_v43 = vmul.f32 %v3927_v33, %v3927_v33 }
 0x525   : > { %v2030_v59 = vpop.xlane.xlu1 %2029 }
 0x526   : > { %v2058_v18 = vmul.f32 0.020408163, %v2030_v59  ;;  %v2089_v53 = vsub.f32 %v2057_v34, %v2073_v23  ;;  %v2184_v23 = vld [vmem:[%s3237_s11 + $0x8] sm:$0xff] }
 0x527   : > { %v2044_v27 = vpop.xlane.xlu0 %2043 }
 0x528   : > { %v3042_v28 = vpop.eup %3041  ;;  %v2090_v19 = vsub.f32 %v2058_v18, %v2074_v25  ;;  %v2065_v38 = vmul.f32 0.020408163, %v2044_v27  ;;  %v2105_v17 = vmax.f32 %v2089_v53, 0.0 }
 0x529   : > { %v2046_v47 = vpop.xlane.xlu1 %2045  ;;  %v2168_v50 = vmul.f32 %v3042_v28, %v2120_v35  ;;  %v2192_v28 = vld [vmem:[%s3237_s11 + $0x48] sm:$0xff] }
 0x52a   : > { %v3044_v51 = vpop.eup %3043  ;;  %v2106_v6 = vmax.f32 %v2090_v19, 0.0  ;;  %v2066_v55 = vmul.f32 0.020408163, %v2046_v47  ;;  %v2097_v57 = vsub.f32 %v2065_v38, %v2081_v36  ;;  %v2137_v21 = vadd.f32 1e-05, %v2105_v17  ;;  %v2183_v19 = vld [vmem:[%s3237_s11] sm:$0xff] }
 0x52b   : > { %v1968_v7 = vpop.xlane.xlu0 %1967  ;;  %v2167_v15 = vmul.f32 %v3044_v51, %v2119_v13  ;;  %v3046_v9 = vpop.eup %3045  ;;  %v2200_v61 = vmul.f32 %v2168_v50, %v3905_v0  ;;  %v2122_v38 = vld [vmem:[%s3232_s22 + $0x18] sm:$0xff] }
 0x52c   : > { %v2138_v39 = vadd.f32 1e-05, %v2106_v6  ;;  %v2098_v11 = vsub.f32 %v2066_v55, %v2082_v43  ;;  %v2176_v60 = vmul.f32 %v3046_v9, %v2128_v42  ;;  %v2113_v29 = vmax.f32 %v2097_v57, 0.0  ;;  %v2130_v42 = vld [vmem:[%s3232_s22 + $0x58] sm:$0xff] }
 0x52d   : > { %v1970_v20 = vpop.xlane.xlu1 %1969  ;;  %2233 = vperm.xlu0 %3039, %v2167_v15   ;;  %v3941_v25 = vmul.f32 0.020408163, %v1968_v7  ;;  %v2216_v0 = vsub.f32 %v2184_v23, %v2200_v61  ;;  %v2199_v36 = vmul.f32 %v2167_v15, %v3903_v2 }
 0x52e   : > { %3049 = vrsqrt.f32 %v2138_v39  ;;  %v2114_v62 = vmax.f32 %v2098_v11, 0.0  ;;  %v3048_v56 = vpop.eup %3047  ;;  %v3938_v49 = vmul.f32 0.020408163, %v1970_v20  ;;  %v2208_v59 = vmul.f32 %v2176_v60, %v3901_v12 }
 0x52f   : > { %v1984_v4 = vpop.xlane.xlu0 %1983  ;;  %v2175_v41 = vmul.f32 %v3048_v56, %v2127_v8  ;;  %v2145_v18 = vadd.f32 1e-05, %v2113_v29  ;;  %v2075_v13 = vmul.f32 %v3941_v25, %v3941_v25  ;;  %v2215_v15 = vsub.f32 %v2183_v19, %v2199_v36 }
 0x530   : > { %v2146_v14 = vadd.f32 1e-05, %v2114_v62  ;;  %v2076_v53 = vmul.f32 %v3938_v49, %v3938_v49  ;;  %v3954_v47 = vmul.f32 0.020408163, %v1984_v4  ;;  %v2224_v51 = vsub.f32 %v2192_v28, %v2208_v59 }
 0x531   : > { %v1986_v32 = vpop.xlane.xlu1 %1985  ;;  %2278 = vperm.xlu0 %3039, %v2176_v60   ;;  %2273 = vperm.xlu1 %3040, %v2175_v41   ;;  %v2207_v9 = vmul.f32 %v2175_v41, %v3913_v5  ;;  %v2121_v41 = vld [vmem:[%s3232_s22 + $0x10] sm:$0xff] }
 0x532   : > { %3051 = vrsqrt.f32 %v2146_v14  ;;  %v3946_v27 = vmul.f32 0.020408163, %v1986_v32  ;;  %v2083_v20 = vmul.f32 %v3954_v47, %v3954_v47 }
 0x533   : > { %v2032_v34 = vpop.xlane.xlu0 %2031  ;;  %3053 = vrsqrt.f32 %v2137_v21 }
 0x534   : > { %3055 = vrsqrt.f32 %v2145_v18  ;;  %v2084_v55 = vmul.f32 %v3946_v27, %v3946_v27  ;;  %v2059_v17 = vmul.f32 0.020408163, %v2032_v34  ;;  %v2186_v34 = vld [vmem:[%s3237_s11 + $0x18] sm:$0xff] }
 0x535   : > { %v2034_v35 = vpop.xlane.xlu1 %2033  ;;  %2334 = vperm.xlu0 %3039, %v2216_v0   ;;  %2238 = vperm.xlu1 %3040, %v2168_v50   ;;  %v2191_v50 = vld [vmem:[%s3237_s11 + $0x40] sm:$0xff] }
 0x536   : > { %v2060_v43 = vmul.f32 0.020408163, %v2034_v35  ;;  %v2091_v61 = vsub.f32 %v2059_v17, %v2075_v13  ;;  %v2223_v5 = vsub.f32 %v2191_v50, %v2207_v9  ;;  %v2194_v13 = vld [vmem:[%s3237_s11 + $0x58] sm:$0xff]  ;;  %v2124_v9 = vld [vmem:[%s3232_s22 + $0x28] sm:$0xff] }
 0x537   : > { %v2048_v12 = vpop.xlane.xlu0 %2047 }
 0x538   : > { %v3050_v6 = vpop.eup %3049  ;;  %v2092_v2 = vsub.f32 %v2060_v43, %v2076_v53  ;;  %v2067_v62 = vmul.f32 0.020408163, %v2048_v12  ;;  %v2107_v59 = vmax.f32 %v2091_v61, 0.0 }
 0x539   : > { %v2050_v7 = vpop.xlane.xlu1 %2049  ;;  %2374 = vperm.xlu0 %3039, %v2224_v51   ;;  %v3959_v39 = vmul.f32 %v3050_v6, %v2122_v38  ;;  %2329 = vperm.xlu1 %3040, %v2215_v15   ;;  %v2129_v38 = vld [vmem:[%s3232_s22 + $0x50] sm:$0xff] }
 0x53a   : > { %v2108_v57 = vmax.f32 %v2092_v2, 0.0  ;;  %v2068_v11 = vmul.f32 0.020408163, %v2050_v7  ;;  %v2099_v0 = vsub.f32 %v2067_v62, %v2083_v20  ;;  %v2139_v51 = vadd.f32 1e-05, %v2107_v59 }
 0x53b   : > { %v1972_v8 = vpop.xlane.xlu0 %1971  ;;  %v2202_v14 = vmul.f32 %v3959_v39, %v3919_v46 }
 0x53c   : > { %v3052_v56 = vpop.eup %3051  ;;  %v2140_v21 = vadd.f32 1e-05, %v2108_v57  ;;  %v2100_v4 = vsub.f32 %v2068_v11, %v2084_v55  ;;  %v2115_v12 = vmax.f32 %v2099_v0, 0.0  ;;  %v3979_v57 = vmul.f32 0.020408163, %v1972_v8 }
 0x53d   : > { %v1974_v60 = vpop.xlane.xlu1 %1973  ;;  %v2178_v29 = vmul.f32 %v3052_v56, %v2130_v42  ;;  %v3054_v23 = vpop.eup %3053  ;;  %2369 = vperm.xlu1 %3040, %v2223_v5   ;;  %v2218_v43 = vsub.f32 %v2186_v34, %v2202_v14  ;;  %v2132_v5 = vld [vmem:[%s3232_s22 + $0x68] sm:$0xff] }
 0x53e   : > { %3057 = vrsqrt.f32 %v2140_v21  ;;  %v2116_v32 = vmax.f32 %v2100_v4, 0.0  ;;  %v3969_v53 = vmul.f32 0.020408163, %v1974_v60  ;;  %v2169_v36 = vmul.f32 %v3054_v23, %v2121_v41  ;;  %v3056_v19 = vpop.eup %3055  ;;  %v2185_v60 = vld [vmem:[%s3237_s11 + $0x10] sm:$0xff] }
 0x53f   : > { %2288 = vperm.xlu0 %3039, %v2178_v29   ;;  %v1988_v28 = vpop.xlane.xlu0 %1987  ;;  %v2210_v46 = vmul.f32 %v2178_v29, %v3927_v33  ;;  %v2177_v2 = vmul.f32 %v3056_v19, %v2129_v38  ;;  %v2147_v33 = vadd.f32 1e-05, %v2115_v12  ;;  %v2077_v8 = vmul.f32 %v3979_v57, %v3979_v57  ;;  %v2123_v12 = vld [vmem:[%s3232_s22 + $0x20] sm:$0xff] }
 0x540   : > { %v2148_v18 = vadd.f32 1e-05, %v2116_v32  ;;  %v2078_v6 = vmul.f32 %v3969_v53, %v3969_v53  ;;  %v2201_v56 = vmul.f32 %v2169_v36, %v3917_v44  ;;  %v3989_v14 = vmul.f32 0.020408163, %v1988_v28 }
 0x541   : > { %v1990_v35 = vpop.xlane.xlu1 %1989  ;;  %2243 = vperm.xlu1 %3040, %v2169_v36   ;;  %v2226_v7 = vsub.f32 %v2194_v13, %v2210_v46  ;;  %v2209_v59 = vmul.f32 %v2177_v2, %v3925_v26  ;;  %v2193_v36 = vld [vmem:[%s3237_s11 + $0x50] sm:$0xff] }
 0x542   : > { %3059 = vrsqrt.f32 %v2148_v18  ;;  %v3976_v55 = vmul.f32 0.020408163, %v1990_v35  ;;  %v2217_v34 = vsub.f32 %v2185_v60, %v2201_v56 }
 0x543   : > { %2344 = vperm.xlu0 %3039, %v2218_v43   ;;  %v2036_v11 = vpop.xlane.xlu0 %2035  ;;  %3061 = vrsqrt.f32 %v2139_v51  ;;  %v2188_v43 = vld [vmem:[%s3237_s11 + $0x28] sm:$0xff]  ;;  %v2225_v38 = vsub.f32 %v2193_v36, %v2209_v59  ;;  %v2133_v36 = vld [vmem:[%s3232_s22 + $0x70] sm:$0xff] }
 0x544   : > { %v2086_v42 = vmul.f32 %v3976_v55, %v3976_v55  ;;  %3063 = vrsqrt.f32 %v2147_v33  ;;  %v2061_v23 = vmul.f32 0.020408163, %v2036_v11  ;;  %v2196_v51 = vld [vmem:[%s3237_s11 + $0x68] sm:$0xff]  ;;  %v2126_v33 = vld [vmem:[%s3232_s22 + $0x38] sm:$0xff] }
 0x545   : > { %v2038_v17 = vpop.xlane.xlu1 %2037  ;;  %2283 = vperm.xlu1 %3040, %v2177_v2  }
 0x546   : > { %v2062_v15 = vmul.f32 0.020408163, %v2038_v17  ;;  %v2093_v28 = vsub.f32 %v2061_v23, %v2077_v8  ;;  %v2187_v8 = vld [vmem:[%s3237_s11 + $0x20] sm:$0xff] }
 0x547   : > { %2384 = vperm.xlu0 %3039, %v2226_v7   ;;  %v2052_v44 = vpop.xlane.xlu0 %2051 }
 0x548   : > { %v3058_v50 = vpop.eup %3057  ;;  %v2094_v20 = vsub.f32 %v2062_v15, %v2078_v6  ;;  %v2069_v46 = vmul.f32 0.020408163, %v2052_v44  ;;  %v2109_v6 = vmax.f32 %v2093_v28, 0.0 }
 0x549   : > { %v2054_v62 = vpop.xlane.xlu1 %2053  ;;  %v2172_v61 = vmul.f32 %v3058_v50, %v2124_v9  ;;  %2248 = vperm.xlu1 %3040, %v3959_v39   ;;  %v2085_v39 = vmul.f32 %v3989_v14, %v3989_v14  ;;  %v2131_v9 = vld [vmem:[%s3232_s22 + $0x60] sm:$0xff] }
 0x54a   : > { %v2110_v21 = vmax.f32 %v2094_v20, 0.0  ;;  %v2070_v4 = vmul.f32 0.020408163, %v2054_v62  ;;  %v2134_v62 = vld [vmem:[%s3232_s22 + $0x78] sm:$0xff] }
 0x54b   : > { %v2204_v18 = vmul.f32 %v2172_v61, %v3938_v49  ;;  %v2101_v17 = vsub.f32 %v2069_v46, %v2085_v39  ;;  %v2197_v46 = vld [vmem:[%s3237_s11 + $0x70] sm:$0xff] }
 0x54c   : > { %v3060_v29 = vpop.eup %3059  ;;  %v2142_v32 = vadd.f32 1e-05, %v2110_v21  ;;  %v2102_v41 = vsub.f32 %v2070_v4, %v2086_v42 }
 0x54d   : > { %v2180_v0 = vmul.f32 %v3060_v29, %v2132_v5  ;;  %2339 = vperm.xlu1 %3040, %v2217_v34   ;;  %v2220_v26 = vsub.f32 %v2188_v43, %v2204_v18  ;;  %v3062_v13 = vpop.eup %3061  ;;  %v2117_v50 = vmax.f32 %v2101_v17, 0.0  ;;  %v2190_v29 = vld [vmem:[%s3237_s11 + $0x38] sm:$0xff]  ;;  %v2195_v34 = vld [vmem:[%s3237_s11 + $0x60] sm:$0xff]  ;;  %v2125_v18 = vld [vmem:[%s3232_s22 + $0x30] sm:$0xff] }
 0x54e   : > { %3065 = vrsqrt.f32 %v2142_v32  ;;  %v2118_v35 = vmax.f32 %v2102_v41, 0.0  ;;  %v3064_v2 = vpop.eup %3063  ;;  %v2171_v7 = vmul.f32 %v3062_v13, %v2123_v12 }
 0x54f   : > { %2298 = vperm.xlu0 %3039, %v2180_v0   ;;  %v2212_v49 = vmul.f32 %v2180_v0, %v3946_v27  ;;  %v2141_v27 = vadd.f32 1e-05, %v2109_v6  ;;  %v2179_v42 = vmul.f32 %v3064_v2, %v2131_v9  ;;  %v2149_v21 = vadd.f32 1e-05, %v2117_v50  ;;  %v2198_v0 = vld [vmem:[%s3237_s11 + $0x78] sm:$0xff] }
 0x550   : > { %v2150_v19 = vadd.f32 1e-05, %v2118_v35  ;;  %v2203_v60 = vmul.f32 %v2171_v7, %v3941_v25 }
 0x551   : > { %2379 = vperm.xlu1 %3040, %v2225_v38   ;;  %v2228_v15 = vsub.f32 %v2196_v51, %v2212_v49  ;;  %v2211_v41 = vmul.f32 %v2179_v42, %v3954_v47 }
 0x552   : > { %3067 = vrsqrt.f32 %v2150_v19  ;;  %v2219_v23 = vsub.f32 %v2187_v8, %v2203_v60 }
 0x553   : > { %2354 = vperm.xlu0 %3039, %v2220_v26   ;;  %3069 = vrsqrt.f32 %v2141_v27  ;;  %v2227_v25 = vsub.f32 %v2195_v34, %v2211_v41 }
 0x554   : > { %3071 = vrsqrt.f32 %v2149_v21 }
 0x555   : > { %2253 = vperm.xlu1 %3040, %v2171_v7  }
 0x557   : > { %2394 = vperm.xlu0 %3039, %v2228_v15  }
 0x558   : > { %v3066_v11 = vpop.eup %3065 }
 0x559   : > { %v2174_v20 = vmul.f32 %v3066_v11, %v2126_v33  ;;  %2293 = vperm.xlu1 %3040, %v2179_v42  }
 0x55b   : > { %v2206_v5 = vmul.f32 %v2174_v20, %v3969_v53 }
 0x55c   : > { %v3068_v56 = vpop.eup %3067 }
 0x55d   : > { %v2182_v4 = vmul.f32 %v3068_v56, %v2134_v62  ;;  %2258 = vperm.xlu1 %3040, %v2172_v61   ;;  %v2222_v32 = vsub.f32 %v2190_v29, %v2206_v5  ;;  %v3070_v59 = vpop.eup %3069 }
 0x55e   : > { %v2173_v61 = vmul.f32 %v3070_v59, %v2125_v18  ;;  %v3072_v35 = vpop.eup %3071 }
 0x55f   : > { %2308 = vperm.xlu0 %3039, %v2182_v4   ;;  %v2214_v44 = vmul.f32 %v2182_v4, %v3976_v55  ;;  %v2181_v43 = vmul.f32 %v3072_v35, %v2133_v36  ;;  %v2189_v55 = vld [vmem:[%s3237_s11 + $0x30] sm:$0xff] }
 0x560   : > { %v2205_v47 = vmul.f32 %v2173_v61, %v3979_v57 }
 0x561   : > { %2349 = vperm.xlu1 %3040, %v2219_v23   ;;  %v2230_v53 = vsub.f32 %v2198_v0, %v2214_v44  ;;  %v2213_v28 = vmul.f32 %v2181_v43, %v3989_v14 }
 0x562   : > { %v2221_v39 = vsub.f32 %v2189_v55, %v2205_v47 }
 0x563   : > { %2364 = vperm.xlu0 %3039, %v2222_v32   ;;  %v2229_v19 = vsub.f32 %v2197_v46, %v2213_v28 }
 0x565   : > { %2389 = vperm.xlu1 %3040, %v2227_v25  }
 0x567   : > { %2404 = vperm.xlu0 %3039, %v2230_v53  }
 0x569   : > { %2263 = vperm.xlu1 %3040, %v2173_v61  }
 0x56d   : > { %2303 = vperm.xlu1 %3040, %v2181_v43  }
 0x571   : > { %2268 = vperm.xlu1 %3040, %v2174_v20  }
 0x575   : > { %2359 = vperm.xlu1 %3040, %v2221_v39  }
 0x579   : > { %2399 = vperm.xlu1 %3040, %v2229_v19  }
 0x5ac   : > { %v2234_v38 = vpop.permute.xlu0 %2233 }
 0x5ad   : > { %v2311_v14 = vmul.f32 %v3821_v22, %v2234_v38 }
 0x5b0   : > { %v2279_v26 = vpop.permute.xlu0 %2278  ;;  %v2274_v49 = vpop.permute.xlu1 %2273 }
 0x5b1   : > { %v2320_v57 = vmul.f32 %v3827_v30, %v2279_v26  ;;  %v2319_v9 = vmul.f32 %v3823_v52, %v2274_v49 }
 0x5b4   : > { %v2335_v13 = vpop.permute.xlu0 %2334  ;;  %v2239_v12 = vpop.permute.xlu1 %2238 }
 0x5b5   : > { %v2312_v51 = vmul.f32 %v3825_v10, %v2239_v12 }
 0x5b7   : > { %v2408_v17 = vadd.f32 %v2335_v13, %v2312_v51 }
 0x5b8   : > { %v2375_v6 = vpop.permute.xlu0 %2374  ;;  %v2330_v7 = vpop.permute.xlu1 %2329 }
 0x5b9   : > { %v2416_v2 = vadd.f32 %v2375_v6, %v2320_v57  ;;  %2424 = vst [vmem:[%s3242_s26 + $0x8] sm:$0xff] %v2408_v17  ;;  %v2407_v15 = vadd.f32 %v2330_v7, %v2311_v14 }
 0x5bb   : > { %2432 = vst [vmem:[%s3242_s26 + $0x48] sm:$0xff] %v2416_v2  ;;  %2423 = vst [vmem:[%s3242_s26] sm:$0xff] %v2407_v15 }
 0x5bc   : > { %v2370_v33 = vpop.permute.xlu1 %2369 }
 0x5bd   : > { %v2415_v27 = vadd.f32 %v2370_v33, %v2319_v9 }
 0x5be   : > { %v2289_v11 = vpop.permute.xlu0 %2288 }
 0x5bf   : > { %2431 = vst [vmem:[%s3242_s26 + $0x40] sm:$0xff] %v2415_v27  ;;  %v2322_v22 = vmul.f32 %v3843_v3, %v2289_v11 }
 0x5c0   : > { %v2244_v30 = vpop.permute.xlu1 %2243 }
 0x5c1   : > { %v2313_v52 = vmul.f32 %v3834_v37, %v2244_v30 }
 0x5c2   : > { %v2345_v10 = vpop.permute.xlu0 %2344 }
 0x5c4   : > { %v2284_v50 = vpop.permute.xlu1 %2283 }
 0x5c5   : > { %v2321_v8 = vmul.f32 %v3836_v16, %v2284_v50 }
 0x5c6   : > { %v2385_v42 = vpop.permute.xlu0 %2384 }
 0x5c7   : > { %v2418_v20 = vadd.f32 %v2385_v42, %v2322_v22 }
 0x5c8   : > { %v2249_v62 = vpop.permute.xlu1 %2248 }
 0x5c9   : > { %2434 = vst [vmem:[%s3242_s26 + $0x58] sm:$0xff] %v2418_v20  ;;  %v2314_v56 = vmul.f32 %v3841_v45, %v2249_v62 }
 0x5cb   : > { %v2410_v21 = vadd.f32 %v2345_v10, %v2314_v56 }
 0x5cc   : > { %v2340_v4 = vpop.permute.xlu1 %2339 }
 0x5cd   : > { %2426 = vst [vmem:[%s3242_s26 + $0x18] sm:$0xff] %v2410_v21  ;;  %v2409_v5 = vadd.f32 %v2340_v4, %v2313_v52 }
 0x5ce   : > { %v2299_v60 = vpop.permute.xlu0 %2298 }
 0x5cf   : > { %2425 = vst [vmem:[%s3242_s26 + $0x10] sm:$0xff] %v2409_v5  ;;  %v2324_v32 = vmul.f32 %v3856_v63, %v2299_v60 }
 0x5d0   : > { %v2380_v3 = vpop.permute.xlu1 %2379 }
 0x5d1   : > { %v2417_v23 = vadd.f32 %v2380_v3, %v2321_v8 }
 0x5d2   : > { %v2355_v29 = vpop.permute.xlu0 %2354 }
 0x5d3   : > { %2433 = vst [vmem:[%s3242_s26 + $0x50] sm:$0xff] %v2417_v23 }
 0x5d4   : > { %v2254_v41 = vpop.permute.xlu1 %2253 }
 0x5d5   : > { %v2315_v25 = vmul.f32 %v3850_v54, %v2254_v41 }
 0x5d6   : > { %v2395_v45 = vpop.permute.xlu0 %2394 }
 0x5d7   : > { %v2420_v37 = vadd.f32 %v2395_v45, %v2324_v32 }
 0x5d8   : > { %v2294_v44 = vpop.permute.xlu1 %2293 }
 0x5d9   : > { %2436 = vst [vmem:[%s3242_s26 + $0x68] sm:$0xff] %v2420_v37  ;;  %v2323_v61 = vmul.f32 %v3852_v1, %v2294_v44 }
 0x5dc   : > { %v2259_v34 = vpop.permute.xlu1 %2258 }
 0x5dd   : > { %v2316_v16 = vmul.f32 %v3854_v40, %v2259_v34 }
 0x5de   : > { %v2309_v0 = vpop.permute.xlu0 %2308 }
 0x5df   : > { %v2412_v53 = vadd.f32 %v2355_v29, %v2316_v16  ;;  %v2326_v35 = vmul.f32 %v3873_v31, %v2309_v0 }
 0x5e0   : > { %v2350_v59 = vpop.permute.xlu1 %2349 }
 0x5e1   : > { %2428 = vst [vmem:[%s3242_s26 + $0x28] sm:$0xff] %v2412_v53  ;;  %v2411_v63 = vadd.f32 %v2350_v59, %v2315_v25 }
 0x5e2   : > { %v2365_v18 = vpop.permute.xlu0 %2364 }
 0x5e3   : > { %2427 = vst [vmem:[%s3242_s26 + $0x20] sm:$0xff] %v2411_v63 }
 0x5e4   : > { %v2390_v36 = vpop.permute.xlu1 %2389 }
 0x5e5   : > { %v2419_v47 = vadd.f32 %v2390_v36, %v2323_v61 }
 0x5e6   : > { %v2405_v43 = vpop.permute.xlu0 %2404 }
 0x5e7   : > { %v2422_v55 = vadd.f32 %v2405_v43, %v2326_v35  ;;  %2435 = vst [vmem:[%s3242_s26 + $0x60] sm:$0xff] %v2419_v47 }
 0x5e8   : > { %v2264_v54 = vpop.permute.xlu1 %2263 }
 0x5e9   : > { %2438 = vst [vmem:[%s3242_s26 + $0x78] sm:$0xff] %v2422_v55  ;;  %v2317_v46 = vmul.f32 %v3865_v58, %v2264_v54 }
 0x5ec   : > { %v2304_v40 = vpop.permute.xlu1 %2303 }
 0x5ed   : > { %v2325_v38 = vmul.f32 %v3867_v48, %v2304_v40 }
 0x5f0   : > { %v2269_v39 = vpop.permute.xlu1 %2268 }
 0x5f1   : > { %v2318_v28 = vmul.f32 %v3871_v24, %v2269_v39 }
 0x5f3   : > { %v2414_v1 = vadd.f32 %v2365_v18, %v2318_v28 }
 0x5f4   : > { %v2360_v19 = vpop.permute.xlu1 %2359 }
 0x5f5   : > { %2430 = vst [vmem:[%s3242_s26 + $0x38] sm:$0xff] %v2414_v1  ;;  %v2413_v31 = vadd.f32 %v2360_v19, %v2317_v46 }
 0x5f7   : > { %2429 = vst [vmem:[%s3242_s26 + $0x30] sm:$0xff] %v2413_v31 }
 0x5f8   : > { %v2400_v26 = vpop.permute.xlu1 %2399 }
 0x5f9   : > { %v2421_v49 = vadd.f32 %v2400_v26, %v2325_v38 }
 0x5fb   : > { %2437 = vst [vmem:[%s3242_s26 + $0x70] sm:$0xff] %v2421_v49 }
 0x5fc PF: > { %s18_s9 = sadd.s32 1, %s3111_s9   ;;  %s4091_s27 = sld [smem:[#allocation4_spill]] }
 0x5fd   : > { %p15_p0 = scmp.ge.s32.totalorder %s18_s9, 6   ;;  %s4092_s28 = sld [smem:[#allocation5_spill]] }
 0x5fe   : > { %s4093_s29 = sld [smem:[#allocation6_spill]]  ;;  %s4094_s30 = sld [smem:[#allocation7_spill]] }
 0x5ff   :  { %17 = sbr.rel (!%p15_p0) target bundleno = 3 (0x3), region = 110 }

</bundles_post_ra>
